<compile_context>
chip_gen: v5e
topology: v5e:2x2
jax: 0.10.0
libtpu: 0.0.40
codegen_flags: <defaults>
</compile_context>

<pallas_src>
import math
import functools

import jax
import jax.numpy as jnp
from jax import lax
from jax.experimental import pallas as pl
from jax.experimental.pallas import tpu as pltpu

ACCOUNT_DIM = 64
HIDDEN_DIM = 32          # h
HALF_DIM = HIDDEN_DIM // 2


def _gelu_exact(x):
    # PyTorch nn.GELU() default: exact erf formulation.
    # TODO(synk): optionally switch to the tanh/EUP approximation if the VALU
    # becomes the binding slot and small divergence from PyTorch is acceptable.
    return 0.5 * x * (1.0 + lax.erf(x * (1.0 / math.sqrt(2.0))))


def followpred_kernel(f_ref, t_ref,
                      wenc_ref, benc_ref,
                      w1ft_ref, w1p_ref, b1_ref,
                      w2_ref, b2_ref,
                      w3_ref, b3_ref,
                      out_ref):
    h = HIDDEN_DIM
    cdt = wenc_ref.dtype          # MXU operand dtype (bf16 by default)

    # Per-tile layout change to batch-on-lanes: two XLU transposes plus one
    # sublane concatenate; no HBM round trip, overlaps with MXU work.
    xf = f_ref[...].T                              # (64, block_b)
    xt = t_ref[...].T                              # (64, block_b)
    x = jnp.concatenate([xf, xt], axis=0)          # (128, block_b)

    # Fused encoder: block-diag [[Wf, 0], [0, Wt]] (64, 128) @ (128, block_b).
    # Rows 0:32 = fe, rows 32:64 = te -> single K=128 MXU stream.
    enc = _gelu_exact(
        jnp.dot(wenc_ref[...], x.astype(cdt),
                preferred_element_type=jnp.float32) + benc_ref[...])
    fe = enc[:h, :]
    te = enc[h:2 * h, :]

    # Head layer 1 on cat([fe, te, fe*te]):
    #   W1[:, :64] @ [fe; te]  (one fused dot on the stacked block)
    # + W1[:, 64:] @ (fe * te)
    z1 = (jnp.dot(w1ft_ref[...], enc.astype(cdt),
                  preferred_element_type=jnp.float32)
          + jnp.dot(w1p_ref[...], (fe * te).astype(cdt),
                    preferred_element_type=jnp.float32)
          + b1_ref[...])
    h1 = _gelu_exact(z1)

    # Head layer 2: (16, 32) @ (32, block_b).
    h2 = _gelu_exact(
        jnp.dot(w2_ref[...], h1.astype(cdt),
                preferred_element_type=jnp.float32) + b2_ref[...])

    # Head layer 3 off the MXU: 16-row broadcast multiply + sublane reduce
    # (VPU/XLU).  Output stays a lane-dense (1, block_b) block.
    out_ref[...] = (
        jnp.sum(w3_ref[...] * h2, axis=0, keepdims=True) + b3_ref[...]
    ).astype(out_ref.dtype)


@functools.partial(jax.jit, static_argnames=("block_b", "mxu_dtype"))
def followpred_forward(f, t, params, block_b=4096, mxu_dtype=jnp.bfloat16):
    """f, t: [B, ACCOUNT_DIM] float32.  params in PyTorch layout (W [out, in])."""
    h = HIDDEN_DIM
    d = ACCOUNT_DIM
    B = f.shape[0]

    wf, bf, wt, bt, w1, b1, w2, b2, w3, b3 = params

    # Effective batch tile: large enough to amortize the ~0.35 us per-grid-step
    # overhead, but capped so the grid keeps >= ~8 steps (the "parallel" grid
    # axis is what spreads work across v7x's two TensorCores).
    cap = ((max(1, -(-B // 8)) + 127) // 128) * 128
    bb = max(128, min(block_b, cap))
    assert bb % 128 == 0, "block tile must be a multiple of the 128-lane width"
    grid_n = -(-B // bb)                       # cdiv; last block is an edge block

    # Wrapper-side weight prep (tiny; no activation-sized HBM traffic).
    zero = jnp.zeros((h, d), jnp.float32)
    wenc = jnp.concatenate(
        [jnp.concatenate([wf, zero], axis=1),
         jnp.concatenate([zero, wt], axis=1)], axis=0).astype(mxu_dtype)  # (64, 128)
    benc = jnp.concatenate([bf, bt]).reshape(-1, 1)                       # (64, 1) f32
    w1ft = w1[:, :2 * h].astype(mxu_dtype)                                # (32, 64)
    w1p = w1[:, 2 * h:].astype(mxu_dtype)                                 # (32, 32)
    w2c = w2.astype(mxu_dtype)                                            # (16, 32)
    w3col = w3.reshape(-1, 1)                                             # (16, 1) f32 (VPU path)
    col = lambda b: b.reshape(-1, 1)

    full = lambda shape: pl.BlockSpec(shape, lambda i: (0, 0))

    # Advisory cost estimate for XLA scheduling.
    flops = 2 * B * (2 * d * 2 * h + h * 2 * h + h * h + HALF_DIM * h + HALF_DIM)
    transcendentals = B * (2 * h + h + HALF_DIM)
    bytes_accessed = B * (2 * d * 4 + 4) + 4 * (
        2 * h * 2 * d + 2 * h + h * 2 * h + h * h + h
        + HALF_DIM * h + HALF_DIM + HALF_DIM + 1)

    out = pl.pallas_call(
        followpred_kernel,
        out_shape=jax.ShapeDtypeStruct((1, B), jnp.float32),
        grid_spec=pltpu.PrefetchScalarGridSpec(
            num_scalar_prefetch=0,
            grid=(grid_n,),
            in_specs=[
                pl.BlockSpec((bb, d), lambda i: (i, 0)),        # f tile
                pl.BlockSpec((bb, d), lambda i: (i, 0)),        # t tile
                full((2 * h, 2 * d)),                           # fused encoder W
                full((2 * h, 1)),                               # fused encoder b
                full((h, 2 * h)), full((h, h)), full((h, 1)),   # head L1 (W1ft, W1p, b1)
                full((HALF_DIM, h)), full((HALF_DIM, 1)),       # head L2
                full((HALF_DIM, 1)), full((1, 1)),              # head L3 (VPU path)
            ],
            out_specs=pl.BlockSpec((1, bb), lambda i: (0, i)),  # lane-dense output
        ),
        compiler_params=pltpu.CompilerParams(
            dimension_semantics=("parallel",),
            vmem_limit_bytes=48 * 1024 * 1024),
        cost_estimate=pl.CostEstimate(
            flops=flops,
            transcendentals=transcendentals,
            bytes_accessed=bytes_accessed),
    )(f.astype(jnp.float32), t.astype(jnp.float32),
      wenc, benc, w1ft, w1p, col(b1), w2c, col(b2), w3col, b3.reshape(1, 1))

    return out[0]   # (B,)  — .squeeze(-1) semantics of the PyTorch module


def init_params(key):
    """Deterministic synthetic init, PyTorch layout: W [out, in], b [out]."""
    ks = jax.random.split(key, 10)

    def lin(kw, kb, d_in, d_out):
        bound = 1.0 / math.sqrt(d_in)
        w = jax.random.uniform(kw, (d_out, d_in), jnp.float32, -bound, bound)
        b = jax.random.uniform(kb, (d_out,), jnp.float32, -bound, bound)
        return w, b

    wf, bf = lin(ks[0], ks[1], ACCOUNT_DIM, HIDDEN_DIM)
    wt, bt = lin(ks[2], ks[3], ACCOUNT_DIM, HIDDEN_DIM)
    w1, b1 = lin(ks[4], ks[5], 3 * HIDDEN_DIM, HIDDEN_DIM)
    w2, b2 = lin(ks[6], ks[7], HIDDEN_DIM, HALF_DIM)
    w3, b3 = lin(ks[8], ks[9], HALF_DIM, 1)
    return (wf, bf, wt, bt, w1, b1, w2, b2, w3, b3)


def followpred_reference(f, t, params):
    """Pure-JAX reference (PyTorch semantics) for correctness checking."""
    wf, bf, wt, bt, w1, b1, w2, b2, w3, b3 = params
    g = lambda x: jax.nn.gelu(x, approximate=False)
    fe = g(f @ wf.T + bf)
    te = g(t @ wt.T + bt)
    x = jnp.concatenate([fe, te, fe * te], -1)
    h1 = g(x @ w1.T + b1)
    h2 = g(h1 @ w2.T + b2)
    return (h2 @ w3.T + b3)[:, 0]


if __name__ == "__main__":
    key = jax.random.PRNGKey(0)
    kp, kf, kt = jax.random.split(key, 3)

    # Small demo shapes; B is deliberately ragged to exercise the cdiv-grid
    # edge-block path (no padding copies).
    B = 200
    params = init_params(kp)
    f = jax.random.normal(kf, (B, ACCOUNT_DIM), jnp.float32)
    t = jax.random.normal(kt, (B, ACCOUNT_DIM), jnp.float32)

    ref = followpred_reference(f, t, params)

    # Default path: bf16 MXU operands, f32 accumulate (~1e-3 relative accuracy).
    out_bf16 = jax.block_until_ready(followpred_forward(f, t, params))
    assert out_bf16.shape == (B,)
    assert jnp.allclose(out_bf16, ref, atol=5e-2, rtol=5e-2), (out_bf16, ref)

    # Full-f32 MXU path matches the exact-erf reference tightly.
    out_f32 = jax.block_until_ready(
        followpred_forward(f, t, params, mxu_dtype=jnp.float32))
    assert out_f32.shape == (B,)
    assert jnp.allclose(out_f32, ref, atol=1e-4, rtol=1e-4), (out_f32, ref)

    print("KERNEL_OK")
</pallas_src>

<mosaic_0001>
module attributes {stable_mosaic.version = 11 : i64} {
  func.func @followpred_kernel(%arg0: i32, %arg1: memref<128x64xf32, #tpu.memory_space<vmem>>, %arg2: memref<128x64xf32, #tpu.memory_space<vmem>>, %arg3: memref<64x128xbf16, #tpu.memory_space<vmem>>, %arg4: memref<64x1xf32, #tpu.memory_space<vmem>>, %arg5: memref<32x64xbf16, #tpu.memory_space<vmem>>, %arg6: memref<32x32xbf16, #tpu.memory_space<vmem>>, %arg7: memref<32x1xf32, #tpu.memory_space<vmem>>, %arg8: memref<16x32xbf16, #tpu.memory_space<vmem>>, %arg9: memref<16x1xf32, #tpu.memory_space<vmem>>, %arg10: memref<16x1xf32, #tpu.memory_space<vmem>>, %arg11: memref<1x1xf32, #tpu.memory_space<vmem>>, %arg12: memref<1x128xf32, #tpu.memory_space<vmem>>) attributes {dimension_semantics = [#tpu.dimension_semantics<parallel>], iteration_bounds = array<i64: 2>, scalar_prefetch = 0 : i64, scratch_operands = 0 : i64, tpu.core_type = #tpu.core_type<tc>, window_params = [{transform_indices = @transform_0, window_bounds = array<i64: 128, 64>}, {transform_indices = @transform_1, window_bounds = array<i64: 128, 64>}, {pipeline_mode = #tpu.pipeline_mode<synchronous>, transform_indices = @transform_2, window_bounds = array<i64: 64, 128>}, {pipeline_mode = #tpu.pipeline_mode<synchronous>, transform_indices = @transform_3, window_bounds = array<i64: 64, 1>}, {pipeline_mode = #tpu.pipeline_mode<synchronous>, transform_indices = @transform_4, window_bounds = array<i64: 32, 64>}, {pipeline_mode = #tpu.pipeline_mode<synchronous>, transform_indices = @transform_5, window_bounds = array<i64: 32, 32>}, {pipeline_mode = #tpu.pipeline_mode<synchronous>, transform_indices = @transform_6, window_bounds = array<i64: 32, 1>}, {pipeline_mode = #tpu.pipeline_mode<synchronous>, transform_indices = @transform_7, window_bounds = array<i64: 16, 32>}, {pipeline_mode = #tpu.pipeline_mode<synchronous>, transform_indices = @transform_8, window_bounds = array<i64: 16, 1>}, {pipeline_mode = #tpu.pipeline_mode<synchronous>, transform_indices = @transform_9, window_bounds = array<i64: 16, 1>}, {pipeline_mode = #tpu.pipeline_mode<synchronous>, transform_indices = @transform_10, window_bounds = array<i64: 1, 1>}, {transform_indices = @transform_11, window_bounds = array<i64: 1, 128>}]} {
    %c0 = arith.constant 0 : index
    %c0_0 = arith.constant 0 : index
    %0 = vector.load %arg1[%c0, %c0_0] : memref<128x64xf32, #tpu.memory_space<vmem>>, vector<128x64xf32>
    %1 = tpu.transpose %0, [1, 0] : vector<128x64xf32> -> vector<64x128xf32>
    %c0_1 = arith.constant 0 : index
    %c0_2 = arith.constant 0 : index
    %2 = vector.load %arg2[%c0_1, %c0_2] : memref<128x64xf32, #tpu.memory_space<vmem>>, vector<128x64xf32>
    %3 = tpu.transpose %2, [1, 0] : vector<128x64xf32> -> vector<64x128xf32>
    %4 = tpu.concatenate %1, %3 in 0 : vector<64x128xf32>, vector<64x128xf32> -> vector<128x128xf32>
    %c0_3 = arith.constant 0 : index
    %c0_4 = arith.constant 0 : index
    %5 = vector.load %arg3[%c0_3, %c0_4] : memref<64x128xbf16, #tpu.memory_space<vmem>>, vector<64x128xbf16>
    %6 = arith.truncf %4 : vector<128x128xf32> to vector<128x128xbf16>
    %cst = arith.constant dense<0.000000e+00> : vector<64x128xf32>
    %7 = tpu.matmul %5, %6, %cst {dimension_numbers = #tpu.dot_dimension_numbers<[1], [0], [0], [1], [0, 0, 1, 1], [], []>} : vector<64x128xbf16>, vector<128x128xbf16>, vector<64x128xf32> -> vector<64x128xf32>
    %c0_5 = arith.constant 0 : index
    %c0_6 = arith.constant 0 : index
    %8 = vector.load %arg4[%c0_5, %c0_6] : memref<64x1xf32, #tpu.memory_space<vmem>>, vector<64x1xf32>
    %9 = vector.broadcast %8 : vector<64x1xf32> to vector<64x128xf32>
    %10 = arith.addf %7, %9 : vector<64x128xf32>
    %cst_7 = arith.constant 5.000000e-01 : f32
    %11 = vector.broadcast %cst_7 : f32 to vector<64x128xf32>
    %12 = arith.mulf %11, %10 : vector<64x128xf32>
    %cst_8 = arith.constant 0.707106769 : f32
    %13 = vector.broadcast %cst_8 : f32 to vector<64x128xf32>
    %14 = arith.mulf %10, %13 : vector<64x128xf32>
    %15 = math.erf %14 : vector<64x128xf32>
    %cst_9 = arith.constant 1.000000e+00 : f32
    %16 = vector.broadcast %cst_9 : f32 to vector<64x128xf32>
    %17 = arith.addf %16, %15 : vector<64x128xf32>
    %18 = arith.mulf %12, %17 : vector<64x128xf32>
    %19 = vector.extract_strided_slice %18 {offsets = [0, 0], sizes = [32, 128], strides = [1, 1]} : vector<64x128xf32> to vector<32x128xf32>
    %20 = vector.extract_strided_slice %18 {offsets = [32, 0], sizes = [32, 128], strides = [1, 1]} : vector<64x128xf32> to vector<32x128xf32>
    %c0_10 = arith.constant 0 : index
    %c0_11 = arith.constant 0 : index
    %21 = vector.load %arg5[%c0_10, %c0_11] : memref<32x64xbf16, #tpu.memory_space<vmem>>, vector<32x64xbf16>
    %22 = arith.truncf %18 : vector<64x128xf32> to vector<64x128xbf16>
    %cst_12 = arith.constant dense<0.000000e+00> : vector<32x128xf32>
    %23 = tpu.matmul %21, %22, %cst_12 {dimension_numbers = #tpu.dot_dimension_numbers<[1], [0], [0], [1], [0, 0, 1, 1], [], []>} : vector<32x64xbf16>, vector<64x128xbf16>, vector<32x128xf32> -> vector<32x128xf32>
    %c0_13 = arith.constant 0 : index
    %c0_14 = arith.constant 0 : index
    %24 = vector.load %arg6[%c0_13, %c0_14] : memref<32x32xbf16, #tpu.memory_space<vmem>>, vector<32x32xbf16>
    %25 = arith.mulf %19, %20 : vector<32x128xf32>
    %26 = arith.truncf %25 : vector<32x128xf32> to vector<32x128xbf16>
    %cst_15 = arith.constant dense<0.000000e+00> : vector<32x128xf32>
    %27 = tpu.matmul %24, %26, %cst_15 {dimension_numbers = #tpu.dot_dimension_numbers<[1], [0], [0], [1], [0, 0, 1, 1], [], []>} : vector<32x32xbf16>, vector<32x128xbf16>, vector<32x128xf32> -> vector<32x128xf32>
    %28 = arith.addf %23, %27 : vector<32x128xf32>
    %c0_16 = arith.constant 0 : index
    %c0_17 = arith.constant 0 : index
    %29 = vector.load %arg7[%c0_16, %c0_17] : memref<32x1xf32, #tpu.memory_space<vmem>>, vector<32x1xf32>
    %30 = vector.broadcast %29 : vector<32x1xf32> to vector<32x128xf32>
    %31 = arith.addf %28, %30 : vector<32x128xf32>
    %cst_18 = arith.constant 5.000000e-01 : f32
    %32 = vector.broadcast %cst_18 : f32 to vector<32x128xf32>
    %33 = arith.mulf %32, %31 : vector<32x128xf32>
    %cst_19 = arith.constant 0.707106769 : f32
    %34 = vector.broadcast %cst_19 : f32 to vector<32x128xf32>
    %35 = arith.mulf %31, %34 : vector<32x128xf32>
    %36 = math.erf %35 : vector<32x128xf32>
    %cst_20 = arith.constant 1.000000e+00 : f32
    %37 = vector.broadcast %cst_20 : f32 to vector<32x128xf32>
    %38 = arith.addf %37, %36 : vector<32x128xf32>
    %39 = arith.mulf %33, %38 : vector<32x128xf32>
    %c0_21 = arith.constant 0 : index
    %c0_22 = arith.constant 0 : index
    %40 = vector.load %arg8[%c0_21, %c0_22] : memref<16x32xbf16, #tpu.memory_space<vmem>>, vector<16x32xbf16>
    %41 = arith.truncf %39 : vector<32x128xf32> to vector<32x128xbf16>
    %cst_23 = arith.constant dense<0.000000e+00> : vector<16x128xf32>
    %42 = tpu.matmul %40, %41, %cst_23 {dimension_numbers = #tpu.dot_dimension_numbers<[1], [0], [0], [1], [0, 0, 1, 1], [], []>} : vector<16x32xbf16>, vector<32x128xbf16>, vector<16x128xf32> -> vector<16x128xf32>
    %c0_24 = arith.constant 0 : index
    %c0_25 = arith.constant 0 : index
    %43 = vector.load %arg9[%c0_24, %c0_25] : memref<16x1xf32, #tpu.memory_space<vmem>>, vector<16x1xf32>
    %44 = vector.broadcast %43 : vector<16x1xf32> to vector<16x128xf32>
    %45 = arith.addf %42, %44 : vector<16x128xf32>
    %cst_26 = arith.constant 5.000000e-01 : f32
    %46 = vector.broadcast %cst_26 : f32 to vector<16x128xf32>
    %47 = arith.mulf %46, %45 : vector<16x128xf32>
    %cst_27 = arith.constant 0.707106769 : f32
    %48 = vector.broadcast %cst_27 : f32 to vector<16x128xf32>
    %49 = arith.mulf %45, %48 : vector<16x128xf32>
    %50 = math.erf %49 : vector<16x128xf32>
    %cst_28 = arith.constant 1.000000e+00 : f32
    %51 = vector.broadcast %cst_28 : f32 to vector<16x128xf32>
    %52 = arith.addf %51, %50 : vector<16x128xf32>
    %53 = arith.mulf %47, %52 : vector<16x128xf32>
    %c0_29 = arith.constant 0 : index
    %c0_30 = arith.constant 0 : index
    %54 = vector.load %arg10[%c0_29, %c0_30] : memref<16x1xf32, #tpu.memory_space<vmem>>, vector<16x1xf32>
    %55 = vector.broadcast %54 : vector<16x1xf32> to vector<16x128xf32>
    %56 = arith.mulf %55, %53 : vector<16x128xf32>
    %cst_31 = arith.constant dense<0.000000e+00> : vector<128xf32>
    %57 = vector.multi_reduction <add>, %56, %cst_31 [0] : vector<16x128xf32> to vector<128xf32>
    %58 = vector.shape_cast %57 : vector<128xf32> to vector<1x128xf32>
    %c0_32 = arith.constant 0 : index
    %c0_33 = arith.constant 0 : index
    %59 = vector.load %arg11[%c0_32, %c0_33] : memref<1x1xf32, #tpu.memory_space<vmem>>, vector<1x1xf32>
    %60 = vector.broadcast %59 : vector<1x1xf32> to vector<1x128xf32>
    %61 = arith.addf %58, %60 : vector<1x128xf32>
    %c0_34 = arith.constant 0 : index
    %c0_35 = arith.constant 0 : index
    %62 = vector.load %arg12[%c0_34, %c0_35] : memref<1x128xf32, #tpu.memory_space<vmem>>, vector<1x128xf32>
    tpu.vector_store %arg12[%c0_34, %c0_35], %61 {strides = array<i32>} : memref<1x128xf32, #tpu.memory_space<vmem>>, vector<1x128xf32>,
    return
  }
  func.func @transform_0(%arg0: i32) -> (i32, i32) {
    %c0_i32 = arith.constant 0 : i32
    %c0_i32_0 = arith.constant 0 : i32
    return %arg0, %c0_i32 : i32, i32
  }
  func.func @transform_1(%arg0: i32) -> (i32, i32) {
    %c0_i32 = arith.constant 0 : i32
    %c0_i32_0 = arith.constant 0 : i32
    return %arg0, %c0_i32 : i32, i32
  }
  func.func @transform_2(%arg0: i32) -> (i32, i32) {
    %c0_i32 = arith.constant 0 : i32
    %c0_i32_0 = arith.constant 0 : i32
    %c0_i32_1 = arith.constant 0 : i32
    return %c0_i32, %c0_i32_0 : i32, i32
  }
  func.func @transform_3(%arg0: i32) -> (i32, i32) {
    %c0_i32 = arith.constant 0 : i32
    %c0_i32_0 = arith.constant 0 : i32
    %c0_i32_1 = arith.constant 0 : i32
    return %c0_i32, %c0_i32_0 : i32, i32
  }
  func.func @transform_4(%arg0: i32) -> (i32, i32) {
    %c0_i32 = arith.constant 0 : i32
    %c0_i32_0 = arith.constant 0 : i32
    %c0_i32_1 = arith.constant 0 : i32
    return %c0_i32, %c0_i32_0 : i32, i32
  }
  func.func @transform_5(%arg0: i32) -> (i32, i32) {
    %c0_i32 = arith.constant 0 : i32
    %c0_i32_0 = arith.constant 0 : i32
    %c0_i32_1 = arith.constant 0 : i32
    return %c0_i32, %c0_i32_0 : i32, i32
  }
  func.func @transform_6(%arg0: i32) -> (i32, i32) {
    %c0_i32 = arith.constant 0 : i32
    %c0_i32_0 = arith.constant 0 : i32
    %c0_i32_1 = arith.constant 0 : i32
    return %c0_i32, %c0_i32_0 : i32, i32
  }
  func.func @transform_7(%arg0: i32) -> (i32, i32) {
    %c0_i32 = arith.constant 0 : i32
    %c0_i32_0 = arith.constant 0 : i32
    %c0_i32_1 = arith.constant 0 : i32
    return %c0_i32, %c0_i32_0 : i32, i32
  }
  func.func @transform_8(%arg0: i32) -> (i32, i32) {
    %c0_i32 = arith.constant 0 : i32
    %c0_i32_0 = arith.constant 0 : i32
    %c0_i32_1 = arith.constant 0 : i32
    return %c0_i32, %c0_i32_0 : i32, i32
  }
  func.func @transform_9(%arg0: i32) -> (i32, i32) {
    %c0_i32 = arith.constant 0 : i32
    %c0_i32_0 = arith.constant 0 : i32
    %c0_i32_1 = arith.constant 0 : i32
    return %c0_i32, %c0_i32_0 : i32, i32
  }
  func.func @transform_10(%arg0: i32) -> (i32, i32) {
    %c0_i32 = arith.constant 0 : i32
    %c0_i32_0 = arith.constant 0 : i32
    %c0_i32_1 = arith.constant 0 : i32
    return %c0_i32, %c0_i32_0 : i32, i32
  }
  func.func @transform_11(%arg0: i32) -> (i32, i32) {
    %c0_i32 = arith.constant 0 : i32
    %c0_i32_0 = arith.constant 0 : i32
    return %c0_i32, %arg0 : i32, i32
  }
}

</mosaic_0001>

<bundles_post_ra>
// kernel: followpred_forward.1
= control target key start
LH: loop header
LB: loop body
LE: loop exit
PB: predicated region body
PF: predicated region fallthrough
CT: control target
= control target key end

     0   :  { %s2628_s0 = inlined_call_operand.vmem [shape: f32[200,64], index: 0, kind: input, shape index: {}]   ;;  %s2629_s1 = inlined_call_operand.vmem [shape: f32[200,64], index: 1, kind: input, shape index: {}]   ;;  %s2630_s2 = inlined_call_operand.vmem [shape: bf16[64,128], index: 2, kind: input, shape index: {}]   ;;  %s2631_s3 = inlined_call_operand.vmem [shape: f32[64,1], index: 3, kind: input, shape index: {}]   ;;  %s2632_s4 = inlined_call_operand.vmem [shape: bf16[32,64], index: 4, kind: input, shape index: {}]   ;;  %s2633_s5 = inlined_call_operand.vmem [shape: bf16[32,32], index: 5, kind: input, shape index: {}]   ;;  %s2634_s6 = inlined_call_operand.vmem [shape: f32[32,1], index: 6, kind: input, shape index: {}]   ;;  %s2635_s7 = inlined_call_operand.vmem [shape: bf16[16,32], index: 7, kind: input, shape index: {}]   ;;  %s2636_s8 = inlined_call_operand.vmem [shape: f32[16,1], index: 8, kind: input, shape index: {}]   ;;  %s2637_s9 = inlined_call_operand.vmem [shape: f32[16,1], index: 9, kind: input, shape index: {}]   ;;  %s2638_s10 = inlined_call_operand.<no memory space> [shape: f32[1,1], index: 10, kind: input, shape index: {}]   ;;  %s2639_s11 = inlined_call_operand.hbm [shape: f32[1,200], index: 11, kind: output, shape index: {}]  }
   0x1   :  { %v16_v0 = vstv %s2638_s10 }
   0x2   :  { %17 = vst [vmem:[#allocation2] sm:$0x1] %v16_v0 }
   0x3   :  { %18 = vsyncpa [#allocation4], 0 }
   0x4   :  { %20 = vsyncpa [#allocation4 + $0x1], 0  ;;  %s1899_s19 = smov 0   ;;  %s1901_s20 = smov 0  }
   0x5   :  { %s1903_s21 = smov 0   ;;  %s1905_s22 = smov 0  }
   0x6 LB: > { %s1920_s10 = sadd.s32 4294967295, %s1833_s22   ;;  %s1546_s23 = sadd.s32 4294967294, %s1833_s22   ;;  %s1833_s22 = sphi %s1905_s22, %s2665_s22   ;;  %s1829_s21 = sphi %s1903_s21, %s2664_s21   ;;  %s1825_s20 = sphi %s1901_s20, %s2663_s20   ;;  %s1821_s19 = sphi %s1899_s19, %s2662_s19  }
   0x7   : > { %s1924_s24 = sadd.s32 1, %s1833_s22   ;;  %s274_s25 = sadd.s32 1, %s1829_s21 }
   0x8   : > { %s271_s26 = ssub.s32 %s1833_s22, %s1924_s24  ;;  %p284_p0 = scmp.ne.s32.totalorder %s1829_s21, %s1825_s20 }
   0x9   : > { %p272_p1 = scmp.eq.s32.totalorder %s271_s26, 0  ;;  %p285_p2 = scmp.eq.s32.totalorder %s1920_s10, 1 }
   0xa   : > { %p290_p3 = scmp.ne.s32.totalorder %s1825_s20, %s1821_s19  ;;  %p291_p4 = scmp.eq.s32.totalorder %s1546_s23, 1 }
   0xb   : > { %s1935_s27 = scalar_select %p272_p1, %s1829_s21, %s274_s25  }
   0xc   : > { %p1937_p5 = por %p285_p2, %p284_p0  ;;  %p1941_p6 = por %p291_p4, %p290_p3 }
   0xd   : > { %p1549_p7 = scmp.ge.s32.totalorder %s1833_s22, 1  ;;  %p370_p8 = scmp.lt.s32.totalorder %s1833_s22, 3 }
   0xf   : > { %p371_p9 = pnand %p1549_p7, %p370_p8 }
  0x10   : > { %s1550_s30 = sshll.u32 (!%p371_p9), %s1920_s10, 4  ;;  %s420_s14 = sand.u32 (!%p371_p9), 1, %s1825_s20  }
  0x11   : > { %374 = sbr.rel (%p371_p9) target bundleno = 956 (0x3bc), region = 64  ;;  %p427_p10 = scmp.lt.s32.totalorder (!%p371_p9), %s1550_s30, 24 }
  0x12   : > { %s1475_s17 = scalar_lea.hbm (!%p371_p9), %s2639_s11, %s1920_s10  ;;  %s1467_s26 = scalar_lea.sflag (!%p371_p9), [#allocation4], %s420_s14 }
  0x13   : > { %s1479_s25 = sshll.u32 (!%p371_p9), %s1475_s17, 4  ;;  %s1480_s25 = int_to_ptr.hbm [resolvable:$true] %s1479_s25 }
  0x16   : > { %s2667_s30 = smov (!%p427_p10, %s1550_s30), 24  ;;  %v1835_v55 = vmov 0   ;;  %v569_v57 = vld [vmem:[%s2631_s3 + $0x30] sm:$0xff]  ;;  %v570_v58 = vld [vmem:[%s2631_s3 + $0x38] sm:$0xff]  ;;  %v563_v62 = vld [vmem:[%s2631_s3] sm:$0xff] }
  0x17   : > { %s1551_s12 = sshll.u32 %s2667_s30, 3  ;;  %1740 = vset.pattern.permute.xlu1 %v1835_v55  ;;  %1741 = vset.pattern.permute.xlu2 %v1835_v55  ;;  %v565_v60 = vld [vmem:[%s2631_s3 + $0x10] sm:$0xff]  ;;  %v567_v0 = vld [vmem:[%s2631_s3 + $0x20] sm:$0xff]  ;;  %s1785_s30 = sshra.s32 %s1480_s25, 4  ;;  %s1786_s30 = int_to_ptr.hbm [resolvable:$true] %s1785_s30 }
  0x18   : > { %s1951_s15 = scalar_lea.vmem %s2628_s0, %s1551_s12  ;;  %s1956_s18 = scalar_lea.vmem %s2629_s1, %s1551_s12  ;;  %603 = vperm.xlu1 %1740, %v569_v57   ;;  %593 = vperm.xlu2 %1741, %v567_v0  }
  0x19   : > { %v451_v1 = vld [vmem:[%s1951_s15] sm:$0xff]  ;;  %v452_v4 = vld [vmem:[%s1951_s15 + $0x8] sm:$0xff]  ;;  %v453_v7 = vld [vmem:[%s1951_s15 + $0x10] sm:$0xff]  ;;  %s1787_s12 = scalar_lea.hbm %s1786_s30, 1  ;;  %p1792_p0 = scmp.lt.s32.totalorder %s1786_s30, %s2639_s11 }
  0x1a   : > { %v499_v2 = vld [vmem:[%s1956_s18] sm:$0xff]  ;;  %v500_v5 = vld [vmem:[%s1956_s18 + $0x8] sm:$0xff]  ;;  %v501_v8 = vld [vmem:[%s1956_s18 + $0x10] sm:$0xff]  ;;  %p1788_p11 = scmp.ne.s32.totalorder %s1786_s30, %s1787_s12 }
  0x1b   : > { %v1668_v3 = vpack.i.bf16 %v451_v1, %v499_v2  ;;  %v1670_v6 = vpack.i.bf16 %v452_v4, %v500_v5  ;;  %v1672_v9 = vpack.i.bf16 %v453_v7, %v501_v8  ;;  %v454_v10 = vld [vmem:[%s1951_s15 + $0x18] sm:$0xff]  ;;  %v455_v13 = vld [vmem:[%s1951_s15 + $0x20] sm:$0xff]  ;;  %v456_v16 = vld [vmem:[%s1951_s15 + $0x28] sm:$0xff] }
  0x1c   : > { %v502_v11 = vld [vmem:[%s1956_s18 + $0x18] sm:$0xff]  ;;  %v503_v14 = vld [vmem:[%s1956_s18 + $0x20] sm:$0xff]  ;;  %v504_v17 = vld [vmem:[%s1956_s18 + $0x28] sm:$0xff]  ;;  %p1789_p12 = pnand %p1788_p11, %p1937_p5 }
  0x1d   : > { %1669 = vxpose.xlu0.b32.start [1/16] (narrow) %v1668_v3, 64  ;;  %v1674_v12 = vpack.i.bf16 %v454_v10, %v502_v11  ;;  %v1676_v15 = vpack.i.bf16 %v455_v13, %v503_v14  ;;  %v1678_v18 = vpack.i.bf16 %v456_v16, %v504_v17  ;;  %v457_v19 = vld [vmem:[%s1951_s15 + $0x30] sm:$0xff]  ;;  %v458_v22 = vld [vmem:[%s1951_s15 + $0x38] sm:$0xff]  ;;  %v459_v25 = vld [vmem:[%s1951_s15 + $0x40] sm:$0xff] }
  0x1e   : > { %v505_v20 = vld [vmem:[%s1956_s18 + $0x30] sm:$0xff]  ;;  %v506_v23 = vld [vmem:[%s1956_s18 + $0x38] sm:$0xff]  ;;  %v507_v26 = vld [vmem:[%s1956_s18 + $0x40] sm:$0xff]  ;;  %p1790_p13 = pneg %p1789_p12 }
  0x1f   : > { %v1680_v21 = vpack.i.bf16 %v457_v19, %v505_v20  ;;  %v1682_v24 = vpack.i.bf16 %v458_v22, %v506_v23  ;;  %v1684_v27 = vpack.i.bf16 %v459_v25, %v507_v26  ;;  %v460_v28 = vld [vmem:[%s1951_s15 + $0x48] sm:$0xff]  ;;  %v461_v31 = vld [vmem:[%s1951_s15 + $0x50] sm:$0xff]  ;;  %v462_v34 = vld [vmem:[%s1951_s15 + $0x58] sm:$0xff] }
  0x20   : > { %v508_v29 = vld [vmem:[%s1956_s18 + $0x48] sm:$0xff]  ;;  %v509_v32 = vld [vmem:[%s1956_s18 + $0x50] sm:$0xff]  ;;  %v510_v35 = vld [vmem:[%s1956_s18 + $0x58] sm:$0xff]  ;;  %608 = vperm.xlu1 %1740, %v570_v58  }
  0x21   : > { %v1686_v30 = vpack.i.bf16 %v460_v28, %v508_v29  ;;  %v1688_v33 = vpack.i.bf16 %v461_v31, %v509_v32  ;;  %v1690_v36 = vpack.i.bf16 %v462_v34, %v510_v35  ;;  %v463_v37 = vld [vmem:[%s1951_s15 + $0x60] sm:$0xff]  ;;  %v464_v40 = vld [vmem:[%s1951_s15 + $0x68] sm:$0xff]  ;;  %v465_v43 = vld [vmem:[%s1951_s15 + $0x70] sm:$0xff] }
  0x22   : > { %v511_v38 = vld [vmem:[%s1956_s18 + $0x60] sm:$0xff]  ;;  %v512_v41 = vld [vmem:[%s1956_s18 + $0x68] sm:$0xff]  ;;  %v513_v44 = vld [vmem:[%s1956_s18 + $0x70] sm:$0xff] }
  0x23   : > { %v1692_v39 = vpack.i.bf16 %v463_v37, %v511_v38  ;;  %v1694_v42 = vpack.i.bf16 %v464_v40, %v512_v41  ;;  %v1696_v45 = vpack.i.bf16 %v465_v43, %v513_v44  ;;  %v466_v46 = vld [vmem:[%s1951_s15 + $0x78] sm:$0xff]  ;;  %v1108_v1 = vld [vmem:[%s2634_s6 + $0x10] sm:$0xff]  ;;  %v568_v7 = vld [vmem:[%s2631_s3 + $0x28] sm:$0xff]  ;;  %s1791_s15 = scalar_lea.hbm %s2639_s11, 2 }
  0x24   : > { %v514_v47 = vld [vmem:[%s1956_s18 + $0x78] sm:$0xff]  ;;  %598 = vperm.xlu2 %1741, %v568_v7   ;;  %v1106_v11 = vld [vmem:[%s2634_s6] sm:$0xff]  ;;  %v564_v23 = vld [vmem:[%s2631_s3 + $0x8] sm:$0xff]  ;;  %s421_s18 = scalar_lea.vmem [#allocation3], %s420_s14  ;;  %p1793_p1 = scmp.lt.s32.totalorder %s1791_s15, %s1787_s12 }
  0x25   : > { %1671 = vxpose.xlu0.b32.cont [2/16] (narrow) %v1670_v6, 64  ;;  %v1698_v48 = vpack.i.bf16 %v466_v46, %v514_v47  ;;  %v1314_v19 = vld [vmem:[%s2636_s8] sm:$0xff]  ;;  %v1107_v34 = vld [vmem:[%s2634_s6 + $0x8] sm:$0xff]  ;;  %v1614_v37 = vld [vmem:[%s2630_s2 + $0x18] sm:$0xff]  ;;  %s1477_s23 = sshll.u32 %s421_s18, 4  ;;  %s1478_s23 = int_to_ptr.vmem [resolvable:$true] %s1477_s23 }
  0x26   : > { %v1457_v31 = vld [vmem:[#allocation2] sm:$0x1]  ;;  %v1315_v35 = vld [vmem:[%s2636_s8 + $0x8] sm:$0xff]  ;;  %p1794_p2 = por %p1793_p1, %p1792_p0 }
  0x27   : > { %v1611_v32 = vld [vmem:[%s2630_s2] sm:$0xff]  ;;  %v1437_v38 = vld [vmem:[%s2637_s9 + $0x8] sm:$0xff] }
  0x28   : > { %583 = vperm.xlu1 %1740, %v565_v60   ;;  %p1795_p3 = pnand %p1794_p2, %p1790_p13 }
  0x2d   : > { %1673 = vxpose.xlu0.b32.cont [3/16] (narrow) %v1672_v9, 64 }
  0x30   : > { %573 = vperm.xlu1 %1740, %v563_v62  }
  0x35   : > { %1675 = vxpose.xlu0.b32.cont [4/16] (narrow) %v1674_v12, 64 }
  0x38   : > { %1122 = vperm.xlu1 %1740, %v1108_v1  }
  0x3d   : > { %1677 = vxpose.xlu0.b32.cont [5/16] (narrow) %v1676_v15, 64  ;;  %v566_v15 = vld [vmem:[%s2631_s3 + $0x18] sm:$0xff] }
  0x3e   : > { %588 = vperm.xlu2 %1741, %v566_v15  }
  0x40   : > { %1112 = vperm.xlu1 %1740, %v1106_v11  }
  0x45   : > { %1679 = vxpose.xlu0.b32.cont [6/16] (narrow) %v1678_v18, 64 }
  0x46   : > { %578 = vperm.xlu2 %1741, %v564_v23  }
  0x48   : > { %1318 = vperm.xlu1 %1740, %v1314_v19  }
  0x4d   : > { %1681 = vxpose.xlu0.b32.cont [7/16] (narrow) %v1680_v21, 64 }
  0x55   : > { %1683 = vxpose.xlu0.b32.cont [8/16] (narrow) %v1682_v24, 64 }
  0x5d   : > { %1685 = vxpose.xlu0.b32.cont [9/16] (narrow) %v1684_v27, 64  ;;  %v1436_v27 = vld [vmem:[%s2637_s9] sm:$0xff] }
  0x5e   : > { %1440 = vperm.xlu1 %1740, %v1436_v27  }
  0x65   : > { %1687 = vxpose.xlu0.b32.cont [10/16] (narrow) %v1686_v30, 64  ;;  %v1109_v30 = vld [vmem:[%s2634_s6 + $0x18] sm:$0xff] }
  0x66   : > { %1127 = vperm.xlu2 %1741, %v1109_v30   ;;  %1460 = vperm.xlu1 %1740, %v1457_v31  }
  0x6d   : > { %1689 = vxpose.xlu0.b32.cont [11/16] (narrow) %v1688_v33, 64  ;;  %v1613_v33 = vld [vmem:[%s2630_s2 + $0x10] sm:$0xff] }
  0x6e   : > { %1117 = vperm.xlu2 %1741, %v1107_v34  }
  0x72   : > { %v594_v40 = vpop.permute.xlu2 %593 }
  0x75   : > { %1691 = vxpose.xlu0.b32.cont [12/16] (narrow) %v1690_v36, 64  ;;  %v1612_v36 = vld [vmem:[%s2630_s2 + $0x8] sm:$0xff] }
  0x76   : > { %1323 = vperm.xlu2 %1741, %v1315_v35  }
  0x7d   : > { %1693 = vxpose.xlu0.b32.cont [13/16] (narrow) %v1692_v39, 64 }
  0x7e   : > { %1445 = vperm.xlu2 %1741, %v1437_v38  }
  0x85   : > { %1695 = vxpose.xlu0.b32.cont [14/16] (narrow) %v1694_v42, 64  ;;  %v599_v42 = vpop.permute.xlu2 %598 }
  0x8a   : > { %v604_v39 = vpop.permute.xlu1 %603 }
  0x8d   : > { %1697 = vxpose.xlu0.b32.cont [15/16] (narrow) %v1696_v45, 64 }
  0x92   : > { %v2062_v41 = vpop.permute.xlu1 %608 }
  0x95   : > { %1699 = vxpose.xlu0.b32.end [16/16] (narrow) %v1698_v48, 64 }
  0x98   : > { %v589_v44 = vpop.permute.xlu2 %588 }
  0x9a   : > { %v584_v43 = vpop.permute.xlu1 %583 }
  0xa2   : > { %v574_v45 = vpop.permute.xlu1 %573 }
  0xc1   : > { %v1700_v49 = vpop.trf.xlu0 }
  0xc2   : > { %v1704_v52 = vunpack.i.h.bf16 %v1700_v49  ;;  %v1701_v16 = vunpack.i.l.bf16 %v1700_v49 }
  0xc9   : > { %v1705_v50 = vpop.trf.xlu0 }
  0xca   : > { %v1709_v51 = vunpack.i.h.bf16 %v1705_v50  ;;  %v1706_v14 = vunpack.i.l.bf16 %v1705_v50 }
  0xcc   : > { %v1990_v53 = vpack.c.bf16 %v1709_v51, %v1704_v52  ;;  %v559_v17 = vpack.c.bf16 %v1706_v14, %v1701_v16 }
  0xd1   : > { %v1992_v54 = vpop.trf.xlu0 }
  0xd2   : > { %v1711_v12 = vunpack.i.l.bf16 %v1992_v54  ;;  %v1714_v28 = vunpack.i.h.bf16 %v1992_v54 }
  0xd9   : > { %v1994_v56 = vpop.trf.xlu0 }
  0xda   : > { %v1716_v10 = vunpack.i.l.bf16 %v1994_v56  ;;  %v1719_v26 = vunpack.i.h.bf16 %v1994_v56 }
  0xdc   : > { %v560_v13 = vpack.c.bf16 %v1716_v10, %v1711_v12  ;;  %v556_v29 = vpack.c.bf16 %v1719_v26, %v1714_v28 }
  0xe1   : > { %v1720_v59 = vpop.trf.xlu0 }
  0xe2   : > { %v1721_v8 = vunpack.i.l.bf16 %v1720_v59  ;;  %v1724_v24 = vunpack.i.h.bf16 %v1720_v59 }
  0xe9   : > { %v1725_v61 = vpop.trf.xlu0 }
  0xea   : > { %v1726_v6 = vunpack.i.l.bf16 %v1725_v61  ;;  %v1729_v22 = vunpack.i.h.bf16 %v1725_v61 }
  0xec   : > { %v561_v9 = vpack.c.bf16 %v1726_v6, %v1721_v8  ;;  %v557_v25 = vpack.c.bf16 %v1729_v22, %v1724_v24 }
  0xf1   : > { %v1730_v63 = vpop.trf.xlu0 }
  0xf2   : > { %v1731_v4 = vunpack.i.l.bf16 %v1730_v63  ;;  %v1734_v20 = vunpack.i.h.bf16 %v1730_v63 }
  0xf9   : > { %v1735_v2 = vpop.trf.xlu0 }
  0xfa   : > { %v1736_v3 = vunpack.i.l.bf16 %v1735_v2  ;;  %v1739_v18 = vunpack.i.h.bf16 %v1735_v2 }
  0xfc   : > { %v562_v5 = vpack.c.bf16 %v1736_v3, %v1731_v4  ;;  %1742 = vset.pattern.permute.xlu0 %v1835_v55  ;;  %v558_v21 = vpack.c.bf16 %v1739_v18, %v1734_v20 }
  0xfe   : > { %635 = vmatpush.bf16.msra.mxu0 %v562_v5  ;;  %1620 = vmatpush.bf16.msra.mxu3 %v562_v5 }
 0x102   : > { %636 = vmatpush.bf16.msra.mxu0 %v561_v9  ;;  %1621 = vmatpush.bf16.msra.mxu3 %v561_v9 }
 0x106   : > { %637 = vmatpush.bf16.msra.mxu0 %v560_v13  ;;  %1622 = vmatpush.bf16.msra.mxu3 %v560_v13 }
 0x10a   : > { %638 = vmatpush.bf16.msra.mxu0 %v559_v17  ;;  %1623 = vmatpush.bf16.msra.mxu3 %v559_v17 }
 0x10e   : > { %639 = vmatpush.bf16.msra.mxu0 %v558_v21  ;;  %1624 = vmatpush.bf16.msra.mxu3 %v558_v21 }
 0x112   : > { %640 = vmatpush.bf16.msra.mxu0 %v557_v25  ;;  %1625 = vmatpush.bf16.msra.mxu3 %v557_v25 }
 0x116   : > { %641 = vmatpush.bf16.msra.mxu0 %v556_v29  ;;  %1626 = vmatpush.bf16.msra.mxu3 %v556_v29 }
 0x11a   : > { %642 = vmatpush.bf16.msra.mxu0 %v1990_v53  ;;  %1627 = vmatpush.bf16.msra.mxu3 %v1990_v53  ;;  %v579_v53 = vpop.permute.xlu2 %578 }
 0x11d   : > { %643 = vmatmul.bf16.vlgmr.msra.gmra.mxu0 %v1611_v32  ;;  %653 = vmatmul.bf16.vlgmr.msra.gmra.mxu3 %v1613_v33 }
 0x12d   : > { %648 = vmatmul.bf16.gmra.mxu0 %v1612_v36  ;;  %658 = vmatmul.bf16.gmra.mxu3 %v1614_v37 }
 0x19a   : > { %v644_v46 = vpop.f32.mrf.mxu0 }
 0x19b   : > { %v2064_v47 = vadd.f32 %v644_v46, %v574_v45 }
 0x19d   : > { %v2067_v48 = vmul.f32 0.70710677, %v2064_v47 }
 0x19f   : > { %v680_v49 = vmul.f32 %v2067_v48, %v2067_v48 }
 0x1a0   : > { %v654_v50 = vpop.f32.mrf.mxu3 }
 0x1a1   : > { %v2071_v51 = vmin.f32 %v680_v49, 16.0  ;;  %v2073_v52 = vadd.f32 %v654_v50, %v594_v40 }
 0x1a2   : > { %v646_v54 = vpop.f32.mrf.mxu0 }
 0x1a3   : > { %v693_v55 = vmul.f32 3.8918573e-05, %v2071_v51  ;;  %v2076_v56 = vadd.f32 %v646_v54, %v579_v53  ;;  %v2079_v58 = vmul.f32 0.70710677, %v2073_v52  ;;  %v682_v59 = vmul.f32 2.1237322e-06, %v2071_v51 }
 0x1a5   : > { %v694_v57 = vadd.f32 0.001143296, %v693_v55  ;;  %v2083_v60 = vmul.f32 0.70710677, %v2076_v56  ;;  %v840_v63 = vmul.f32 %v2079_v58, %v2079_v58  ;;  %v683_v0 = vadd.f32 0.00028619796, %v682_v59 }
 0x1a7   : > { %v695_v61 = vmul.f32 %v694_v57, %v2071_v51  ;;  %v720_v62 = vmul.f32 %v2083_v60, %v2083_v60  ;;  %v2095_v7 = vmin.f32 %v840_v63, 16.0  ;;  %v684_v8 = vmul.f32 %v683_v0, %v2071_v51 }
 0x1a8   : > { %v656_v2 = vpop.f32.mrf.mxu3 }
 0x1a9   : > { %v2090_v1 = vmin.f32 %v720_v62, 16.0  ;;  %v696_v4 = vadd.f32 0.014752088, %v695_v61  ;;  %v842_v12 = vmul.f32 2.1237322e-06, %v2095_v7  ;;  %v2108_v18 = vadd.f32 %v656_v2, %v599_v42 }
 0x1aa   : > { %v649_v3 = vpop.f32.mrf.mxu0  ;;  %v685_v14 = vadd.f32 0.0036580483, %v684_v8  ;;  %v853_v59 = vmul.f32 3.8918573e-05, %v2095_v7 }
 0x1ab   : > { %v733_v5 = vmul.f32 3.8918573e-05, %v2090_v1  ;;  %v2093_v6 = vadd.f32 %v649_v3, %v584_v43  ;;  %v697_v10 = vmul.f32 %v696_v4, %v2071_v51  ;;  %v843_v20 = vadd.f32 0.00028619796, %v842_v12 }
 0x1ac   : > { %v722_v21 = vmul.f32 2.1237322e-06, %v2090_v1  ;;  %v686_v22 = vmul.f32 %v685_v14, %v2071_v51  ;;  %v2115_v27 = vmul.f32 0.70710677, %v2108_v18  ;;  %v854_v14 = vadd.f32 0.001143296, %v853_v59 }
 0x1ad   : > { %v734_v9 = vadd.f32 0.001143296, %v733_v5  ;;  %v2100_v11 = vmul.f32 0.70710677, %v2093_v6  ;;  %v698_v16 = vadd.f32 0.112945676, %v697_v10  ;;  %v844_v28 = vmul.f32 %v843_v20, %v2095_v7 }
 0x1ae   : > { %v723_v29 = vadd.f32 0.00028619796, %v722_v21  ;;  %v687_v31 = vadd.f32 0.05243302, %v686_v22  ;;  %v880_v36 = vmul.f32 %v2115_v27, %v2115_v27 }
 0x1af   : > { %v760_v13 = vmul.f32 %v2100_v11, %v2100_v11  ;;  %v735_v15 = vmul.f32 %v734_v9, %v2090_v1  ;;  %v699_v24 = vmul.f32 %v698_v16, %v2071_v51  ;;  %v845_v38 = vadd.f32 0.0036580483, %v844_v28 }
 0x1b0   : > { %v659_v19 = vpop.f32.mrf.mxu3  ;;  %v688_v43 = vmul.f32 %v687_v31, %v2071_v51  ;;  %v2132_v53 = vmin.f32 %v880_v36, 16.0  ;;  %v855_v36 = vmul.f32 %v854_v14, %v2095_v7 }
 0x1b1   : > { %v2106_v17 = vmin.f32 %v760_v13, 16.0  ;;  %v736_v23 = vadd.f32 0.014752088, %v735_v15  ;;  %v660_v26 = vadd.f32 %v659_v19, %v604_v39  ;;  %v700_v33 = vadd.f32 0.4994258, %v699_v24 }
 0x1b2   : > { %v651_v30 = vpop.f32.mrf.mxu0  ;;  %v724_v39 = vmul.f32 %v723_v29, %v2090_v1  ;;  %v846_v55 = vmul.f32 %v845_v38, %v2095_v7  ;;  %v689_v61 = vadd.f32 0.18741608, %v688_v43  ;;  %v882_v5 = vmul.f32 2.1237322e-06, %v2132_v53 }
 0x1b3   : > { %v773_v25 = vmul.f32 3.8918573e-05, %v2106_v17  ;;  %v737_v32 = vmul.f32 %v736_v23, %v2090_v1  ;;  %v2119_v35 = vmul.f32 0.70710677, %v660_v26  ;;  %v2123_v37 = vadd.f32 %v651_v30, %v589_v44 }
 0x1b4   : > { %v762_v46 = vmul.f32 2.1237322e-06, %v2106_v17  ;;  %v701_v49 = vmul.f32 %v700_v33, %v2071_v51  ;;  %v725_v57 = vadd.f32 0.0036580483, %v724_v39  ;;  %v847_v9 = vadd.f32 0.05243302, %v846_v55 }
 0x1b5   : > { %v774_v34 = vadd.f32 0.001143296, %v773_v25  ;;  %v920_v42 = vmul.f32 %v2119_v35, %v2119_v35  ;;  %v738_v45 = vadd.f32 0.112945676, %v737_v32  ;;  %v2137_v54 = vmul.f32 0.70710677, %v2123_v37 }
 0x1b6   : > { %v763_v63 = vadd.f32 0.00028619796, %v762_v46  ;;  %v2143_v2 = vadd.f32 1.0, %v701_v49  ;;  %v726_v10 = vmul.f32 %v725_v57, %v2090_v1  ;;  %v690_v15 = vmul.f32 %v689_v61, %v2071_v51 }
 0x1b7   : > { %v775_v40 = vmul.f32 %v774_v34, %v2106_v17  ;;  %v2134_v44 = vmin.f32 %v920_v42, 16.0  ;;  %v739_v62 = vmul.f32 %v738_v45, %v2090_v1  ;;  %v800_v4 = vmul.f32 %v2137_v54, %v2137_v54 }
 0x1b8   : > { %v661_v13 = vpop.f32.mrf.mxu3  ;;  %v764_v19 = vmul.f32 %v763_v63, %v2106_v17  ;;  %1743 = vrcp.f32 %v2143_v2  ;;  %v883_v24 = vadd.f32 0.00028619796, %v882_v5  ;;  %v2159_v25 = vmul.f32 0.5, %v2093_v6 }
 0x1b9   : > { %v776_v50 = vadd.f32 0.014752088, %v775_v40  ;;  %v922_v3 = vmul.f32 2.1237322e-06, %v2134_v44  ;;  %v2150_v12 = vmin.f32 %v800_v4, 16.0  ;;  %v2162_v28 = vadd.f32 %v661_v13, %v2062_v41 }
 0x1ba   : > { %v740_v16 = vadd.f32 0.4994258, %v739_v62  ;;  %v848_v51 = vmul.f32 %v847_v9, %v2095_v7  ;;  %v727_v29 = vadd.f32 0.05243302, %v726_v10  ;;  %v765_v33 = vadd.f32 0.0036580483, %v764_v19 }
 0x1bb   : > { %v777_v0 = vmul.f32 %v776_v50, %v2106_v17  ;;  %v923_v21 = vadd.f32 0.00028619796, %v922_v3  ;;  %v802_v22 = vmul.f32 2.1237322e-06, %v2150_v12  ;;  %v813_v23 = vmul.f32 3.8918573e-05, %v2150_v12 }
 0x1bc   : > { %v741_v32 = vmul.f32 %v740_v16, %v2090_v1  ;;  %v691_v38 = vadd.f32 1.1283791, %v690_v15  ;;  %v2168_v40 = vmul.f32 0.5, %v660_v26  ;;  %v884_v41 = vmul.f32 %v883_v24, %v2132_v53 }
 0x1bd   : > { %v778_v8 = vadd.f32 0.112945676, %v777_v0  ;;  %v803_v31 = vadd.f32 0.00028619796, %v802_v22  ;;  %v814_v34 = vadd.f32 0.001143296, %v813_v23  ;;  %v924_v6 = vmul.f32 %v923_v21, %v2134_v44 }
 0x1be   : > { %v2175_v45 = vmul.f32 0.70710677, %v2162_v28  ;;  %v2177_v46 = vpop.eup %1743  ;;  %v714_v49 = vand.u32 2147483648, %v2143_v2  ;;  %v849_v50 = vadd.f32 0.18741608, %v848_v51  ;;  %v728_v55 = vmul.f32 %v727_v29, %v2090_v1 }
 0x1bf   : > { %v779_v20 = vmul.f32 %v778_v8, %v2106_v17  ;;  %v804_v42 = vmul.f32 %v803_v31, %v2150_v12  ;;  %v815_v43 = vmul.f32 %v814_v34, %v2150_v12  ;;  %v2183_v57 = vadd.f32 1.0, %v741_v32 }
 0x1c0   : > { %v766_v59 = vmul.f32 %v765_v33, %v2106_v17  ;;  %v960_v62 = vmul.f32 %v2175_v45, %v2175_v45  ;;  %v2189_v63 = vmul.f32 %v691_v38, %v2067_v48  ;;  %v925_v0 = vadd.f32 0.0036580483, %v924_v6 }
 0x1c1   : > { %v780_v30 = vadd.f32 0.4994258, %v779_v20  ;;  %v816_v61 = vadd.f32 0.014752088, %v815_v43  ;;  %v933_v3 = vmul.f32 3.8918573e-05, %v2134_v44  ;;  %v704_v4 = vmul.f32 %v2177_v46, %v2143_v2 }
 0x1c2   : > { %v885_v5 = vadd.f32 0.0036580483, %v884_v41  ;;  %v805_v8 = vadd.f32 0.0036580483, %v804_v42  ;;  %v712_v10 = vand.u32 2147483647, %v2143_v2  ;;  %v850_v14 = vmul.f32 %v849_v50, %v2095_v7 }
 0x1c3   : > { %v781_v39 = vmul.f32 %v780_v30, %v2106_v17  ;;  %v817_v9 = vmul.f32 %v816_v61, %v2150_v12  ;;  %v2197_v13 = vor.u32 1.1754944e-38, %v714_v49  ;;  %v2200_v48 = vmin.f32 %v960_v62, 16.0 }
 0x1c4   : > { %v729_v15 = vadd.f32 0.18741608, %v728_v55  ;;  %v767_v16 = vadd.f32 0.05243302, %v766_v59  ;;  %v926_v20 = vmul.f32 %v925_v0, %v2134_v44  ;;  %v934_v22 = vadd.f32 0.001143296, %v933_v3 }
 0x1c5   : > { %v2181_v26 = vadd.f32 1.0, %v781_v39  ;;  %v818_v19 = vadd.f32 0.112945676, %v817_v9  ;;  %v962_v21 = vmul.f32 2.1237322e-06, %v2200_v48  ;;  %v705_v24 = vsub.f32 1.0, %v704_v4 }
 0x1c6   : > { %v973_v23 = vmul.f32 3.8918573e-05, %v2200_v48  ;;  %v886_v51 = vmul.f32 %v885_v5, %v2132_v53  ;;  %v806_v29 = vmul.f32 %v805_v8, %v2150_v12  ;;  %v2211_v32 = vadd.f32 1.1283791, %v850_v14 }
 0x1c7   : > { %1745 = vrcp.f32 %v2181_v26  ;;  %v819_v30 = vmul.f32 %v818_v19, %v2150_v12  ;;  %v963_v33 = vadd.f32 0.00028619796, %v962_v21  ;;  %v935_v34 = vmul.f32 %v934_v22, %v2134_v44 }
 0x1c8   : > { %1747 = vrcp.f32 %v2183_v57  ;;  %v974_v38 = vadd.f32 0.001143296, %v973_v23  ;;  %v2215_v39 = vmul.f32 %v729_v15, %v2090_v1  ;;  %v768_v6 = vmul.f32 %v767_v16, %v2106_v17 }
 0x1c9   : > { %v856_v42 = vadd.f32 0.014752088, %v855_v36  ;;  %v927_v43 = vadd.f32 0.05243302, %v926_v20  ;;  %v820_v49 = vadd.f32 0.4994258, %v819_v30  ;;  %v964_v50 = vmul.f32 %v963_v33, %v2200_v48 }
 0x1ca   : > { %v936_v55 = vadd.f32 0.014752088, %v935_v34  ;;  %v706_v61 = vmul.f32 %v2177_v46, %v705_v24  ;;  %v887_v62 = vadd.f32 0.05243302, %v886_v51  ;;  %v807_v0 = vadd.f32 0.05243302, %v806_v29 }
 0x1cb   : > { %v975_v1 = vmul.f32 %v974_v38, %v2200_v48  ;;  %v821_v4 = vmul.f32 %v820_v49, %v2150_v12  ;;  %v965_v5 = vadd.f32 0.0036580483, %v964_v50  ;;  %v769_v36 = vadd.f32 0.18741608, %v768_v6 }
 0x1cc   : > { %v937_v8 = vmul.f32 %v936_v55, %v2134_v44  ;;  %v857_v14 = vmul.f32 %v856_v42, %v2095_v7  ;;  %v893_v15 = vmul.f32 3.8918573e-05, %v2132_v53  ;;  %v928_v19 = vmul.f32 %v927_v43, %v2134_v44 }
 0x1cd   : > { %v2209_v31 = vpop.eup %1745  ;;  %v976_v9 = vadd.f32 0.014752088, %v975_v1  ;;  %v2232_v20 = vadd.f32 1.0, %v821_v4  ;;  %v808_v22 = vmul.f32 %v807_v0, %v2150_v12  ;;  %v966_v23 = vmul.f32 %v965_v5, %v2200_v48 }
 0x1ce   : > { %v784_v41 = vmul.f32 %v2209_v31, %v2181_v26  ;;  %v2221_v59 = vpop.eup %1747  ;;  %v938_v21 = vadd.f32 0.112945676, %v937_v8  ;;  %v858_v51 = vadd.f32 0.112945676, %v857_v14  ;;  %v2239_v30 = vmul.f32 0.5, %v2123_v37 }
 0x1cf   : > { %v744_v16 = vmul.f32 %v2221_v59, %v2183_v57  ;;  %v977_v24 = vmul.f32 %v976_v9, %v2200_v48  ;;  %1749 = vrcp.f32 %v2232_v20  ;;  %v894_v33 = vadd.f32 0.001143296, %v893_v15 }
 0x1d0   : > { %v785_v3 = vsub.f32 1.0, %v784_v41  ;;  %v2243_v34 = vadd.f32 %v2177_v46, %v706_v61  ;;  %v888_v38 = vmul.f32 %v887_v62, %v2132_v53  ;;  %v770_v6 = vmul.f32 %v769_v36, %v2106_v17 }
 0x1d1   : > { %v939_v41 = vmul.f32 %v938_v21, %v2134_v44  ;;  %v745_v42 = vsub.f32 1.0, %v744_v16  ;;  %v929_v43 = vadd.f32 0.18741608, %v928_v19  ;;  %v978_v49 = vadd.f32 0.112945676, %v977_v24 }
 0x1d2   : > { %v786_v29 = vmul.f32 %v2209_v31, %v785_v3  ;;  %v859_v50 = vmul.f32 %v858_v51, %v2095_v7  ;;  %vm709_vm0 = vweird.f32 %v2177_v46  ;;  %vm789_vm1 = vweird.f32 %v2209_v31 }
 0x1d3   : > { %v809_v37 = vadd.f32 0.18741608, %v808_v22  ;;  %v967_v55 = vadd.f32 0.05243302, %v966_v23  ;;  %v940_v0 = vadd.f32 0.4994258, %v939_v41  ;;  %v979_v62 = vmul.f32 %v978_v49, %v2200_v48 }
 0x1d4   : > { %v787_v61 = vadd.f32 %v2209_v31, %v786_v29  ;;  %v860_v1 = vadd.f32 0.4994258, %v859_v50  ;;  %v895_v17 = vmul.f32 %v894_v33, %v2132_v53  ;;  %vm708_vm2 = vweird.f32 %v2143_v2 }
 0x1d5   : > { %v771_v3 = vadd.f32 1.1283791, %v770_v6  ;;  %vm788_vm3 = vweird.f32 %v2181_v26  ;;  %v794_v4 = vand.u32 2147483648, %v2181_v26  ;;  %v941_v5 = vmul.f32 %v940_v0, %v2134_v44  ;;  %v2258_v8 = vpop.eup %1749  ;;  %vm2301_vm7 = vmor %vm708_vm2, %vm709_vm0 }
 0x1d6   : > { %v792_v36 = vand.u32 2147483647, %v2181_v26  ;;  %v980_v9 = vadd.f32 0.4994258, %v979_v62  ;;  %v861_v14 = vmul.f32 %v860_v1, %v2095_v7  ;;  %v896_v15 = vadd.f32 0.014752088, %v895_v17  ;;  %vm2264_vm4 = vmor %vm788_vm3, %vm789_vm1 }
 0x1d7   : > { %v930_v19 = vmul.f32 %v929_v43, %v2134_v44  ;;  %v824_v21 = vmul.f32 %v2258_v8, %v2232_v20  ;;  %v968_v22 = vmul.f32 %v967_v55, %v2200_v48  ;;  %v2272_v23 = vadd.f32 1.0, %v941_v5 }
 0x1d8   : > { %v791_v7 = vsel %vm2264_vm4, %v2209_v31, %v787_v61  ;;  %v810_v26 = vmul.f32 %v809_v37, %v2150_v12  ;;  %v981_v24 = vmul.f32 %v980_v9, %v2200_v48  ;;  %v2279_v51 = vadd.f32 1.0, %v861_v14 }
 0x1d9   : > { %v746_v29 = vmul.f32 %v2221_v59, %v745_v42  ;;  %v795_v44 = vor.u32 1.1754944e-38, %v794_v4  ;;  %v825_v33 = vsub.f32 1.0, %v824_v21  ;;  %1751 = vrcp.f32 %v2272_v23 }
 0x1da   : > { %v772_v6 = vmul.f32 %v771_v3, %v2100_v11  ;;  %vm793_vm5 = vcmp.eq.f32.partialorder %v792_v36, 8.507059e+37  ;;  %v2284_v41 = vadd.f32 1.0, %v981_v24  ;;  %v897_v43 = vmul.f32 %v896_v15, %v2132_v53 }
 0x1db   : > { %v796_v31 = vsel %vm793_vm5, %v795_v44, %v791_v7  ;;  %v826_v12 = vmul.f32 %v2258_v8, %v825_v33  ;;  %v969_v49 = vadd.f32 0.18741608, %v968_v22  ;;  %1753 = vrcp.f32 %v2279_v51 }
 0x1dc   : > { %v931_v50 = vadd.f32 1.1283791, %v930_v19  ;;  %v811_v37 = vadd.f32 1.1283791, %v810_v26  ;;  %v832_v42 = vand.u32 2147483647, %v2232_v20  ;;  %1755 = vrcp.f32 %v2284_v41 }
 0x1dd   : > { %v2292_v55 = vadd.f32 1.1283791, %v2215_v39  ;;  %v754_v11 = vand.u32 2147483648, %v2183_v57  ;;  %v827_v0 = vadd.f32 %v2258_v8, %v826_v12  ;;  %vm829_vm6 = vweird.f32 %v2258_v8 }
 0x1de   : > { %v2305_v62 = vadd.f32 0.18741608, %v888_v38  ;;  %v2307_v1 = vmul.f32 %v796_v31, %v772_v6  ;;  %v834_v39 = vand.u32 2147483648, %v2232_v20  ;;  %v898_v17 = vadd.f32 0.112945676, %v897_v43 }
 0x1df   : > { %v1752_v3 = vpop.eup %1751  ;;  %v711_v4 = vsel %vm2301_vm7, %v2177_v46, %v2243_v34  ;;  %v2315_v5 = vadd.f32 %v2221_v59, %v746_v29  ;;  %vm828_vm8 = vweird.f32 %v2232_v20  ;;  %v970_v36 = vmul.f32 %v969_v49, %v2200_v48 }
 0x1e0   : > { %v932_v38 = vmul.f32 %v931_v50, %v2119_v35  ;;  %v812_v9 = vmul.f32 %v811_v37, %v2137_v54  ;;  %vm2321_vm9 = vmor %vm828_vm8, %vm829_vm6  ;;  %vm2325_vm10 = vcmp.eq.f32.partialorder %v832_v42, 8.507059e+37  ;;  %v944_v16 = vmul.f32 %v1752_v3, %v2272_v23 }
 0x1e1   : > { %v2330_v19 = vpop.eup %1753  ;;  %v831_v48 = vsel %vm2321_vm9, %v2258_v8, %v827_v0  ;;  %v952_v35 = vand.u32 2147483647, %v2272_v23  ;;  %v954_v54 = vand.u32 2147483648, %v2272_v23  ;;  %v899_v20 = vmul.f32 %v898_v17, %v2132_v53 }
 0x1e2   : > { %v1756_v21 = vpop.eup %1755  ;;  %vm749_vm11 = vweird.f32 %v2221_v59  ;;  %v835_v22 = vor.u32 1.1754944e-38, %v834_v39  ;;  %v945_v7 = vsub.f32 1.0, %v944_v16  ;;  %v1572_v26 = vclamps-f32 %v2307_v1, 1.0 }
 0x1e3   : > { %v864_v24 = vmul.f32 %v2330_v19, %v2279_v51  ;;  %v971_v29 = vadd.f32 1.1283791, %v970_v36  ;;  %vm948_vm12 = vweird.f32 %v2272_v23  ;;  %v984_v8 = vmul.f32 %v1756_v21, %v2284_v41 }
 0x1e4   : > { %v900_v44 = vadd.f32 0.4994258, %v899_v20  ;;  %vm748_vm13 = vweird.f32 %v2183_v57  ;;  %v836_v33 = vsel %vm2325_vm10, %v835_v22, %v831_v48  ;;  %v946_v6 = vmul.f32 %v1752_v3, %v945_v7 }
 0x1e5   : > { %vm949_vm14 = vweird.f32 %v1752_v3  ;;  %v865_v43 = vsub.f32 1.0, %v864_v24  ;;  %vm2349_vm15 = vcmp.eq.f32.partialorder %v712_v10, 8.507059e+37  ;;  %vm2353_vm0 = vcmp.eq.f32.partialorder %v952_v35, 8.507059e+37  ;;  %vm2387_vm10 = vmor %vm748_vm13, %vm749_vm11 }
 0x1e6   : > { %v955_v49 = vor.u32 1.1754944e-38, %v954_v54  ;;  %v985_v50 = vsub.f32 1.0, %v984_v8  ;;  %v901_v37 = vmul.f32 %v900_v44, %v2132_v53  ;;  %v947_v42 = vadd.f32 %v1752_v3, %v946_v6  ;;  %vm950_vm1 = vmor %vm948_vm12, %vm949_vm14 }
 0x1e7   : > { %v992_v0 = vand.u32 2147483647, %v2284_v41  ;;  %v994_v1 = vand.u32 2147483648, %v2284_v41  ;;  %v866_v39 = vmul.f32 %v2330_v19, %v865_v43  ;;  %v837_v2 = vmul.f32 %v836_v33, %v812_v9 }
 0x1e8   : > { %v986_v10 = vmul.f32 %v1756_v21, %v985_v50  ;;  %vm989_vm2 = vweird.f32 %v1756_v21  ;;  %v2363_v17 = vadd.f32 1.0, %v901_v37  ;;  %v951_v36 = vsel %vm950_vm1, %v1752_v3, %v947_v42 }
 0x1e9   : > { %vm988_vm3 = vweird.f32 %v2284_v41  ;;  %v867_v14 = vadd.f32 %v2330_v19, %v866_v39  ;;  %vm869_vm4 = vweird.f32 %v2330_v19  ;;  %v956_v15 = vsel %vm2353_vm0, %v955_v49, %v951_v36 }
 0x1ea   : > { %v987_v16 = vadd.f32 %v1756_v21, %v986_v10  ;;  %v874_v9 = vand.u32 2147483648, %v2279_v51  ;;  %1757 = vrcp.f32 %v2363_v17  ;;  %v957_v23 = vmul.f32 %v956_v15, %v932_v38  ;;  %vm990_vm5 = vmor %vm988_vm3, %vm989_vm2 }
 0x1eb   : > { %v995_v48 = vor.u32 1.1754944e-38, %v994_v1  ;;  %vm868_vm6 = vweird.f32 %v2279_v51  ;;  %v872_v3 = vand.u32 2147483647, %v2279_v51  ;;  %v972_v41 = vmul.f32 %v971_v29, %v2175_v45 }
 0x1ec   : > { %v991_v35 = vsel %vm990_vm5, %v1756_v21, %v987_v16  ;;  %vm993_vm8 = vcmp.eq.f32.partialorder %v992_v0, 8.507059e+37  ;;  %v1573_v54 = vclamps-f32 %v837_v2, 1.0  ;;  %vm2375_vm9 = vmor %vm868_vm6, %vm869_vm4  ;;  %v752_v22 = vand.u32 2147483647, %v2183_v57 }
 0x1ed   : > { %v1576_v7 = vclamps-f32 %v957_v23, 1.0  ;;  %v996_v24 = vsel %vm993_vm8, %v995_v48, %v991_v35  ;;  %v871_v38 = vsel %vm2375_vm9, %v2330_v19, %v867_v14  ;;  %v755_v51 = vor.u32 1.1754944e-38, %v754_v11 }
 0x1ee   : > { %v890_v21 = vmul.f32 %v2305_v62, %v2132_v53  ;;  %v997_v29 = vmul.f32 %v996_v24, %v972_v41  ;;  %v875_v8 = vor.u32 1.1754944e-38, %v874_v9  ;;  %v716_v19 = vsel %vm2349_vm15, %v2197_v13, %v711_v4 }
 0x1ef   : > { %v751_v57 = vsel %vm2387_vm10, %v2221_v59, %v2315_v5  ;;  %v1006_v11 = vadd.f32 1.0, %v1576_v7  ;;  %vm873_vm11 = vcmp.eq.f32.partialorder %v872_v3, 8.507059e+37  ;;  %v1002_v62 = vadd.f32 1.0, %v1572_v26 }
 0x1f0   : > { %v1758_v44 = vpop.eup %1757  ;;  %v1577_v53 = vclamps-f32 %v997_v29, 1.0  ;;  %v1003_v33 = vadd.f32 1.0, %v1573_v54  ;;  %v876_v6 = vsel %vm873_vm11, %v875_v8, %v871_v38  ;;  %v852_v61 = vmul.f32 %v2211_v32, %v2079_v58  ;;  %v1123_v29 = vpop.permute.xlu1 %1122 }
 0x1f1   : > { %v732_v46 = vmul.f32 %v2292_v55, %v2083_v60  ;;  %vm753_vm7 = vcmp.eq.f32.partialorder %v752_v22, 8.507059e+37  ;;  %v904_v13 = vmul.f32 %v1758_v44, %v2363_v17  ;;  %v671_v4 = vmul.f32 0.5, %v2162_v28 }
 0x1f2   : > { %v756_v34 = vsel %vm753_vm7, %v755_v51, %v751_v57  ;;  %v1007_v59 = vadd.f32 1.0, %v1577_v53  ;;  %v1014_v5 = vmul.f32 %v1006_v11, %v2168_v40  ;;  %v717_v43 = vmul.f32 %v716_v19, %v2189_v63  ;;  %v1618_v51 = vld [vmem:[%s2633_s5 + $0x8] sm:$0xff]  ;;  %v1128_v19 = vpop.permute.xlu2 %1127 }
 0x1f3   : > { %v891_v26 = vadd.f32 1.1283791, %v890_v21  ;;  %v877_v31 = vmul.f32 %v876_v6, %v852_v61  ;;  %v905_v12 = vsub.f32 1.0, %v904_v13  ;;  %v1010_v58 = vmul.f32 %v1002_v62, %v2159_v25  ;;  %v1616_v21 = vld [vmem:[%s2632_s4 + $0x8] sm:$0xff] }
 0x1f4   : > { %v1015_v49 = vmul.f32 %v1007_v59, %v671_v4  ;;  %v1011_v32 = vmul.f32 %v1003_v33, %v2239_v30  ;;  %v914_v60 = vand.u32 2147483648, %v2363_v17  ;;  %v757_v55 = vmul.f32 %v756_v34, %v732_v46 }
 0x1f5   : > { %v906_v50 = vmul.f32 %v1758_v44, %v905_v12  ;;  %vm909_vm12 = vweird.f32 %v1758_v44  ;;  %v912_v28 = vand.u32 2147483647, %v2363_v17  ;;  %v1030_v42 = vmul.f32 %v1014_v5, %v1010_v58 }
 0x1f6   : > { %v1023_v37 = vpack.c.bf16 %v1015_v49, %v1014_v5  ;;  %v1031_v40 = vmul.f32 %v1015_v49, %v1011_v32  ;;  %v1574_v0 = vclamps-f32 %v877_v31, 1.0  ;;  %vm908_vm13 = vweird.f32 %v2363_v17 }
 0x1f7   : > { %v907_v63 = vadd.f32 %v1758_v44, %v906_v50  ;;  %v892_v1 = vmul.f32 %v891_v26, %v2115_v27  ;;  %vm910_vm14 = vmor %vm908_vm13, %vm909_vm12  ;;  %v915_v30 = vor.u32 1.1754944e-38, %v914_v60  ;;  %v1570_v39 = vclamps-f32 %v717_v43, 1.0 }
 0x1f8   : > { %1091 = vmatpush.bf16.msra.mxu2 %v1023_v37  ;;  %v1033_v25 = vpack.c.bf16 %v1031_v40, %v1030_v42  ;;  %v1571_v2 = vclamps-f32 %v757_v55, 1.0  ;;  %vm913_vm15 = vcmp.eq.f32.partialorder %v912_v28, 8.507059e+37  ;;  %v1004_v15 = vadd.f32 1.0, %v1574_v0 }
 0x1f9   : > { %v911_v10 = vsel %vm910_vm14, %v1758_v44, %v907_v63  ;;  %v1000_v16 = vadd.f32 1.0, %v1570_v39  ;;  %v668_v9 = vmul.f32 0.5, %v2073_v52  ;;  %v664_v17 = vmul.f32 0.5, %v2064_v47  ;;  %v1617_v52 = vld [vmem:[%s2633_s5] sm:$0xff]  ;;  %v1113_v44 = vpop.permute.xlu1 %1112 }
 0x1fa   : > { %1057 = vmatpush.bf16.msra.mxu1 %v1033_v25  ;;  %v916_v36 = vsel %vm913_vm15, %v915_v30, %v911_v10  ;;  %v1001_v23 = vadd.f32 1.0, %v1571_v2  ;;  %v665_v27 = vmul.f32 0.5, %v2076_v56  ;;  %v669_v3 = vmul.f32 0.5, %v2108_v18  ;;  %v1615_v18 = vld [vmem:[%s2632_s4] sm:$0xff]  ;;  %v1118_v34 = vpop.permute.xlu2 %1117 }
 0x1fb   : > { %v917_v14 = vmul.f32 %v916_v36, %v892_v1  ;;  %v1012_v35 = vmul.f32 %v1004_v15, %v668_v9  ;;  %v1008_v54 = vmul.f32 %v1000_v16, %v664_v17  ;;  %v1021_v47 = vpack.c.bf16 %v1011_v32, %v1010_v58 }
 0x1fc   : > { %v1009_v20 = vmul.f32 %v1001_v23, %v665_v27  ;;  %vm1044_vm0 = vcmask 261120   ;;  %vm1080_vm1 = vcmask 523264  }
 0x1fd   : > { %v1575_v48 = vclamps-f32 %v917_v14, 1.0  ;;  %v1028_v24 = vmul.f32 %v1012_v35, %v1008_v54 }
 0x1fe   : > { %v1020_v56 = vpack.c.bf16 %v1009_v20, %v1008_v54 }
 0x1ff   : > { %v1005_v41 = vadd.f32 1.0, %v1575_v48 }
 0x201   : > { %v1013_v22 = vmul.f32 %v1005_v41, %v669_v3 }
 0x203   : > { %v1022_v7 = vpack.c.bf16 %v1013_v22, %v1012_v35  ;;  %v1029_v38 = vmul.f32 %v1013_v22, %v1009_v20 }
 0x205   : > { %1092 = vmatpush.bf16.msra.mxu2 %v1022_v7  ;;  %v1032_v45 = vpack.c.bf16 %v1029_v38, %v1028_v24 }
 0x207   : > { %1058 = vmatpush.bf16.msra.mxu1 %v1032_v45 }
 0x209   : > { %1093 = vmatpush.bf16.msra.mxu2 %v1021_v47 }
 0x20a   : > { %1586 = vmatmul.msk.bf16.vlgmr.msra.gmra.mxu1 %vm1044_vm0, %v1617_v52 }
 0x20d   : > { %1094 = vmatpush.bf16.msra.mxu2 %v1020_v56 }
 0x210   : > { %1596 = vmatmul.msk.bf16.vlgmr.msra.gmra.mxu2 %vm1080_vm1, %v1615_v18 }
 0x21a   : > { %1587 = vmatmul.msk.bf16.gmra.mxu1 %vm1044_vm0, %v1618_v51 }
 0x220   : > { %1597 = vmatmul.msk.bf16.gmra.mxu2 %vm1080_vm1, %v1616_v21 }
 0x287   : > { %v1060_v8 = vpop.f32.mrf.mxu1 }
 0x28f   : > { %v1062_v62 = vpop.f32.mrf.mxu1 }
 0x293   : > { %v1096_v57 = vpop.f32.mrf.mxu2 }
 0x294   : > { %v1097_v11 = vadd.f32 %v1096_v57, %v1060_v8 }
 0x296   : > { %v2439_v53 = vadd.f32 %v1113_v44, %v1097_v11 }
 0x297   : > { %v1065_v43 = vpop.f32.mrf.mxu1 }
 0x298   : > { %v2442_v33 = vmul.f32 0.70710677, %v2439_v53 }
 0x29a   : > { %v1142_v6 = vmul.f32 %v2442_v33, %v2442_v33 }
 0x29b   : > { %v1098_v61 = vpop.f32.mrf.mxu2 }
 0x29c   : > { %v2446_v46 = vmin.f32 %v1142_v6, 16.0  ;;  %v1099_v13 = vadd.f32 %v1098_v61, %v1062_v62 }
 0x29e   : > { %v2448_v4 = vadd.f32 %v1118_v34, %v1099_v13  ;;  %v1155_v59 = vmul.f32 3.8918573e-05, %v2446_v46  ;;  %v1144_v39 = vmul.f32 2.1237322e-06, %v2446_v46 }
 0x29f   : > { %v1067_v0 = vpop.f32.mrf.mxu1 }
 0x2a0   : > { %v2452_v5 = vmul.f32 0.70710677, %v2448_v4  ;;  %v1156_v26 = vadd.f32 0.001143296, %v1155_v59  ;;  %v1145_v17 = vadd.f32 0.00028619796, %v1144_v39 }
 0x2a2   : > { %v1182_v31 = vmul.f32 %v2452_v5, %v2452_v5  ;;  %v1157_v49 = vmul.f32 %v1156_v26, %v2446_v46  ;;  %v1146_v24 = vmul.f32 %v1145_v17, %v2446_v46 }
 0x2a3   : > { %v1101_v12 = vpop.f32.mrf.mxu2 }
 0x2a4   : > { %v2457_v58 = vmin.f32 %v1182_v31, 16.0  ;;  %v1102_v32 = vadd.f32 %v1101_v12, %v1065_v43  ;;  %v1158_v60 = vadd.f32 0.014752088, %v1157_v49  ;;  %v1147_v8 = vadd.f32 0.0036580483, %v1146_v24 }
 0x2a6   : > { %v2459_v55 = vadd.f32 %v1123_v29, %v1102_v32  ;;  %v1195_v50 = vmul.f32 3.8918573e-05, %v2457_v58  ;;  %v1159_v28 = vmul.f32 %v1158_v60, %v2446_v46  ;;  %v1184_v2 = vmul.f32 2.1237322e-06, %v2457_v58 }
 0x2a7   : > { %v1148_v59 = vmul.f32 %v1147_v8, %v2446_v46 }
 0x2a8   : > { %v2464_v37 = vmul.f32 0.70710677, %v2459_v55  ;;  %v1160_v42 = vadd.f32 0.112945676, %v1159_v28  ;;  %v1196_v40 = vadd.f32 0.001143296, %v1195_v50 }
 0x2a9   : > { %v1185_v27 = vadd.f32 0.00028619796, %v1184_v2 }
 0x2aa   : > { %v1222_v63 = vmul.f32 %v2464_v37, %v2464_v37  ;;  %v1161_v25 = vmul.f32 %v1160_v42, %v2446_v46  ;;  %v1197_v30 = vmul.f32 %v1196_v40, %v2457_v58  ;;  %v1149_v42 = vadd.f32 0.05243302, %v1148_v59 }
 0x2ab   : > { %v1103_v1 = vpop.f32.mrf.mxu2  ;;  %v1186_v38 = vmul.f32 %v1185_v27, %v2457_v58 }
 0x2ac   : > { %v1104_v10 = vadd.f32 %v1103_v1, %v1067_v0  ;;  %v2472_v36 = vmin.f32 %v1222_v63, 16.0  ;;  %v1198_v14 = vadd.f32 0.014752088, %v1197_v30  ;;  %v1162_v16 = vadd.f32 0.4994258, %v1161_v25 }
 0x2ae   : > { %v2474_v15 = vadd.f32 %v1128_v19, %v1104_v10  ;;  %v1224_v9 = vmul.f32 2.1237322e-06, %v2472_v36  ;;  %v1235_v23 = vmul.f32 3.8918573e-05, %v2472_v36  ;;  %v1199_v48 = vmul.f32 %v1198_v14, %v2457_v58 }
 0x2af   : > { %v1163_v54 = vmul.f32 %v1162_v16, %v2446_v46  ;;  %v1187_v19 = vadd.f32 0.0036580483, %v1186_v38  ;;  %v1150_v10 = vmul.f32 %v1149_v42, %v2446_v46 }
 0x2b0   : > { %v1225_v3 = vadd.f32 0.00028619796, %v1224_v9  ;;  %v2480_v41 = vmul.f32 0.70710677, %v2474_v15  ;;  %v1236_v35 = vadd.f32 0.001143296, %v1235_v23 }
 0x2b1   : > { %v1200_v20 = vadd.f32 0.112945676, %v1199_v48  ;;  %v2491_v56 = vadd.f32 1.0, %v1163_v54  ;;  %v1188_v31 = vmul.f32 %v1187_v19, %v2457_v58 }
 0x2b2   : > { %v1262_v22 = vmul.f32 %v2480_v41, %v2480_v41  ;;  %v1237_v7 = vmul.f32 %v1236_v35, %v2472_v36  ;;  %v1226_v45 = vmul.f32 %v1225_v3, %v2472_v36  ;;  %v1151_v35 = vadd.f32 0.18741608, %v1150_v10 }
 0x2b3   : > { %v1201_v18 = vmul.f32 %v1200_v20, %v2457_v58  ;;  %1759 = vrcp.f32 %v2491_v56  ;;  %v1189_v0 = vadd.f32 0.05243302, %v1188_v31  ;;  %vm1170_vm2 = vweird.f32 %v2491_v56 }
 0x2b4   : > { %v2489_v52 = vmin.f32 %v1262_v22, 16.0  ;;  %v1238_v47 = vadd.f32 0.014752088, %v1237_v7  ;;  %v1227_v11 = vadd.f32 0.0036580483, %v1226_v45 }
 0x2b5   : > { %v1202_v57 = vadd.f32 0.4994258, %v1201_v18  ;;  %v1190_v16 = vmul.f32 %v1189_v0, %v2457_v58  ;;  %v1174_v19 = vand.u32 2147483647, %v2491_v56 }
 0x2b6   : > { %v1264_v51 = vmul.f32 2.1237322e-06, %v2489_v52  ;;  %v1239_v21 = vmul.f32 %v1238_v47, %v2472_v36  ;;  %v1275_v29 = vmul.f32 3.8918573e-05, %v2489_v52  ;;  %v1228_v12 = vmul.f32 %v1227_v11, %v2472_v36 }
 0x2b7   : > { %v1203_v61 = vmul.f32 %v1202_v57, %v2457_v58  ;;  %v1191_v22 = vadd.f32 0.18741608, %v1190_v16  ;;  %vm1175_vm12 = vcmp.eq.f32.partialorder %v1174_v19, 8.507059e+37 }
 0x2b8   : > { %v1265_v44 = vadd.f32 0.00028619796, %v1264_v51  ;;  %v1240_v62 = vadd.f32 0.112945676, %v1239_v21  ;;  %v1276_v6 = vadd.f32 0.001143296, %v1275_v29  ;;  %v1152_v51 = vmul.f32 %v1151_v35, %v2446_v46 }
 0x2b9   : > { %v2503_v26 = vadd.f32 1.0, %v1203_v61  ;;  %v2509_v28 = vpop.eup %1759  ;;  %v1229_v63 = vadd.f32 0.05243302, %v1228_v12  ;;  %v1192_v29 = vmul.f32 %v1191_v22, %v2457_v58 }
 0x2ba   : > { %v1266_v13 = vmul.f32 %v1265_v44, %v2489_v52  ;;  %v1241_v34 = vmul.f32 %v1240_v62, %v2472_v36  ;;  %v1277_v43 = vmul.f32 %v1276_v6, %v2489_v52  ;;  %v1166_v39 = vmul.f32 %v2509_v28, %v2491_v56 }
 0x2bb   : > { %1761 = vrcp.f32 %v2503_v26  ;;  %v1230_v9 = vmul.f32 %v1229_v63, %v2472_v36  ;;  %vm1171_vm3 = vweird.f32 %v2509_v28  ;;  %vm1210_vm10 = vweird.f32 %v2503_v26 }
 0x2bc   : > { %v1242_v49 = vadd.f32 0.4994258, %v1241_v34  ;;  %v1267_v32 = vadd.f32 0.0036580483, %v1266_v13  ;;  %v1278_v60 = vadd.f32 0.014752088, %v1277_v43  ;;  %vm2541_vm8 = vmor %vm1170_vm2, %vm1171_vm3 }
 0x2bd   : > { %v1167_v27 = vsub.f32 1.0, %v1166_v39  ;;  %v1231_v7 = vadd.f32 0.18741608, %v1230_v9  ;;  %v1216_v13 = vand.u32 2147483648, %v2503_v26  ;;  %v1193_v34 = vadd.f32 1.1283791, %v1192_v29 }
 0x2be   : > { %v1243_v50 = vmul.f32 %v1242_v49, %v2472_v36  ;;  %v1279_v40 = vmul.f32 %v1278_v60, %v2489_v52  ;;  %v1268_v25 = vmul.f32 %v1267_v32, %v2489_v52  ;;  %v1214_v43 = vand.u32 2147483647, %v2503_v26 }
 0x2bf   : > { %v1168_v47 = vmul.f32 %v2509_v28, %v1167_v27  ;;  %v1232_v8 = vmul.f32 %v1231_v7, %v2472_v36  ;;  %v1176_v36 = vand.u32 2147483648, %v2491_v56  ;;  %v1153_v12 = vadd.f32 1.1283791, %v1152_v51 }
 0x2c0   : > { %v1244_v1 = vadd.f32 1.0, %v1243_v50  ;;  %v1280_v30 = vadd.f32 0.112945676, %v1279_v40  ;;  %v1269_v48 = vadd.f32 0.05243302, %v1268_v25  ;;  %v1217_v0 = vor.u32 1.1754944e-38, %v1216_v13 }
 0x2c1   : > { %v2515_v2 = vpop.eup %1761  ;;  %v1169_v46 = vadd.f32 %v2509_v28, %v1168_v47  ;;  %v1233_v59 = vadd.f32 1.1283791, %v1232_v8  ;;  %v1177_v40 = vor.u32 1.1754944e-38, %v1176_v36  ;;  %v1194_v63 = vmul.f32 %v1193_v34, %v2452_v5 }
 0x2c2   : > { %1763 = vrcp.f32 %v1244_v1  ;;  %v1281_v14 = vmul.f32 %v1280_v30, %v2489_v52  ;;  %v1206_v23 = vmul.f32 %v2515_v2, %v2503_v26  ;;  %v1270_v24 = vmul.f32 %v1269_v48, %v2489_v52 }
 0x2c3   : > { %v1256_v44 = vand.u32 2147483648, %v1244_v1  ;;  %v1254_v62 = vand.u32 2147483647, %v1244_v1  ;;  %vm1211_vm5 = vweird.f32 %v2515_v2  ;;  %vm1250_vm6 = vweird.f32 %v1244_v1 }
 0x2c4   : > { %v1282_v17 = vadd.f32 0.4994258, %v1281_v14  ;;  %v1207_v3 = vsub.f32 1.0, %v1206_v23  ;;  %v1271_v57 = vadd.f32 0.18741608, %v1270_v24  ;;  %vm2552_vm11 = vmor %vm1210_vm10, %vm1211_vm5  ;;  %v1173_v42 = vsel %vm2541_vm8, %v2509_v28, %v1169_v46 }
 0x2c5   : > { %v1257_v60 = vor.u32 1.1754944e-38, %v1256_v44  ;;  %vm1255_vm7 = vcmp.eq.f32.partialorder %v1254_v62, 8.507059e+37  ;;  %vm1215_vm13 = vcmp.eq.f32.partialorder %v1214_v43, 8.507059e+37  ;;  %v1178_v10 = vsel %vm1175_vm12, %v1177_v40, %v1173_v42 }
 0x2c6   : > { %v1283_v54 = vmul.f32 %v1282_v17, %v2489_v52  ;;  %v1208_v18 = vmul.f32 %v2515_v2, %v1207_v3  ;;  %v1272_v49 = vmul.f32 %v1271_v57, %v2489_v52  ;;  %v1154_v9 = vmul.f32 %v1153_v12, %v2442_v33 }
 0x2c7   : > { %v1136_v33 = vmul.f32 0.5, %v2459_v55  ;;  %v1134_v29 = vmul.f32 0.5, %v2439_v53  ;;  %v1619_v55 = vld [vmem:[%s2635_s7] sm:$0xff] }
 0x2c8   : > { %v1764_v20 = vpop.eup %1763  ;;  %v2525_v45 = vadd.f32 1.0, %v1283_v54  ;;  %v1209_v6 = vadd.f32 %v2515_v2, %v1208_v18  ;;  %v1273_v30 = vadd.f32 1.1283791, %v1272_v49  ;;  %v1179_v48 = vmul.f32 %v1178_v10, %v1154_v9 }
 0x2c9   : > { %v1246_v38 = vmul.f32 %v1764_v20, %v1244_v1  ;;  %vm1251_vm4 = vweird.f32 %v1764_v20  ;;  %v1234_v1 = vmul.f32 %v1233_v59, %v2464_v37  ;;  %v1135_v18 = vmul.f32 0.5, %v2448_v4 }
 0x2ca   : > { %1765 = vrcp.f32 %v2525_v45  ;;  %vm1252_vm9 = vmor %vm1250_vm6, %vm1251_vm4  ;;  %v1213_v26 = vsel %vm2552_vm11, %v2515_v2, %v1209_v6  ;;  %v1296_v39 = vand.u32 2147483648, %v2525_v45  ;;  %v1294_v2 = vand.u32 2147483647, %v2525_v45  ;;  %v1324_v6 = vpop.permute.xlu2 %1323 }
 0x2cb   : > { %v1247_v21 = vsub.f32 1.0, %v1246_v38  ;;  %v1218_v14 = vsel %vm1215_vm13, %v1217_v0, %v1213_v26  ;;  %vm1290_vm15 = vweird.f32 %v2525_v45  ;;  %v1274_v17 = vmul.f32 %v1273_v30, %v2480_v41 }
 0x2cc   : > { %v1219_v5 = vmul.f32 %v1218_v14, %v1194_v63  ;;  %v1297_v37 = vor.u32 1.1754944e-38, %v1296_v39  ;;  %vm1295_vm2 = vcmp.eq.f32.partialorder %v1294_v2, 8.507059e+37  ;;  %v1598_v24 = vclamps-f32 %v1179_v48, 1.0 }
 0x2cd   : > { %v1248_v11 = vmul.f32 %v1764_v20, %v1247_v21  ;;  %v1137_v38 = vmul.f32 0.5, %v2474_v15  ;;  %v1319_v15 = vpop.permute.xlu1 %1318 }
 0x2ce   : > { %v1302_v41 = vadd.f32 1.0, %v1598_v24 }
 0x2cf   : > { %v1249_v61 = vadd.f32 %v1764_v20, %v1248_v11 }
 0x2d0   : > { %v1766_v31 = vpop.eup %1765  ;;  %v1306_v57 = vmul.f32 %v1302_v41, %v1134_v29 }
 0x2d1   : > { %v1253_v32 = vsel %vm1252_vm9, %v1764_v20, %v1249_v61  ;;  %v1286_v56 = vmul.f32 %v1766_v31, %v2525_v45  ;;  %vm1291_vm14 = vweird.f32 %v1766_v31  ;;  %v1599_v20 = vclamps-f32 %v1219_v5, 1.0 }
 0x2d2   : > { %v1258_v52 = vsel %vm1255_vm7, %v1257_v60, %v1253_v32  ;;  %vm1292_vm1 = vmor %vm1290_vm15, %vm1291_vm14 }
 0x2d3   : > { %v1287_v25 = vsub.f32 1.0, %v1286_v56  ;;  %v1259_v28 = vmul.f32 %v1258_v52, %v1234_v1  ;;  %v1303_v47 = vadd.f32 1.0, %v1599_v20 }
 0x2d5   : > { %v1288_v16 = vmul.f32 %v1766_v31, %v1287_v25  ;;  %v1600_v27 = vclamps-f32 %v1259_v28, 1.0  ;;  %v1307_v19 = vmul.f32 %v1303_v47, %v1135_v18 }
 0x2d7   : > { %v1289_v23 = vadd.f32 %v1766_v31, %v1288_v16  ;;  %v1304_v7 = vadd.f32 1.0, %v1600_v27  ;;  %v1312_v11 = vpack.c.bf16 %v1307_v19, %v1306_v57 }
 0x2d9   : > { %v1293_v3 = vsel %vm1292_vm1, %v1766_v31, %v1289_v23  ;;  %v1308_v51 = vmul.f32 %v1304_v7, %v1136_v33 }
 0x2da   : > { %v1298_v35 = vsel %vm1295_vm2, %v1297_v37, %v1293_v3 }
 0x2db   : > { %v1299_v54 = vmul.f32 %v1298_v35, %v1274_v17 }
 0x2dd   : > { %v1601_v22 = vclamps-f32 %v1299_v54, 1.0 }
 0x2df   : > { %v1305_v45 = vadd.f32 1.0, %v1601_v22 }
 0x2e1   : > { %v1309_v21 = vmul.f32 %v1305_v45, %v1137_v38 }
 0x2e3   : > { %v1313_v8 = vpack.c.bf16 %v1309_v21, %v1308_v51 }
 0x2e5   : > { %1340 = vmatpush.bf16.msrb.mxu1 %v1313_v8 }
 0x2e9   : > { %1341 = vmatpush.bf16.msrb.mxu1 %v1312_v11 }
 0x2ec   : > { %1606 = vmatmul.msk.bf16.vlgmr.msrb.gmra.mxu1 %vm1044_vm0, %v1619_v55 }
 0x369   : > { %v1343_v44 = vpop.f32.mrf.mxu1 }
 0x36a   : > { %v2578_v4 = vadd.f32 %v1343_v44, %v1319_v15 }
 0x36c   : > { %v2581_v62 = vmul.f32 0.70710677, %v2578_v4 }
 0x36e   : > { %v1352_v53 = vmul.f32 %v2581_v62, %v2581_v62 }
 0x370   : > { %v1353_v46 = vmin.f32 %v1352_v53, 16.0 }
 0x371   : > { %v1345_v61 = vpop.f32.mrf.mxu1 }
 0x372   : > { %v1354_v58 = vmul.f32 2.1237322e-06, %v1353_v46  ;;  %v1365_v36 = vmul.f32 3.8918573e-05, %v1353_v46  ;;  %v2585_v13 = vadd.f32 %v1345_v61, %v1324_v6 }
 0x374   : > { %v1355_v34 = vadd.f32 0.00028619796, %v1354_v58  ;;  %v1366_v59 = vadd.f32 0.001143296, %v1365_v36  ;;  %v2588_v43 = vmul.f32 0.70710677, %v2585_v13 }
 0x376   : > { %v1356_v31 = vmul.f32 %v1355_v34, %v1353_v46  ;;  %v1367_v12 = vmul.f32 %v1366_v59, %v1353_v46  ;;  %v1392_v49 = vmul.f32 %v2588_v43, %v2588_v43 }
 0x378   : > { %v1368_v32 = vadd.f32 0.014752088, %v1367_v12  ;;  %v1393_v60 = vmin.f32 %v1392_v49, 16.0  ;;  %v1357_v50 = vadd.f32 0.0036580483, %v1356_v31 }
 0x37a   : > { %v1369_v56 = vmul.f32 %v1368_v32, %v1353_v46  ;;  %v1394_v42 = vmul.f32 2.1237322e-06, %v1393_v60  ;;  %v1405_v26 = vmul.f32 3.8918573e-05, %v1393_v60  ;;  %v1358_v63 = vmul.f32 %v1357_v50, %v1353_v46 }
 0x37b   : > { %v1348_v32 = vmul.f32 0.5, %v2578_v4 }
 0x37c   : > { %v1370_v52 = vadd.f32 0.112945676, %v1369_v56  ;;  %v1395_v40 = vadd.f32 0.00028619796, %v1394_v42  ;;  %v1406_v0 = vadd.f32 0.001143296, %v1405_v26 }
 0x37d   : > { %v1359_v14 = vadd.f32 0.05243302, %v1358_v63  ;;  %v1349_v56 = vmul.f32 0.5, %v2585_v13 }
 0x37e   : > { %v1371_v1 = vmul.f32 %v1370_v52, %v1353_v46  ;;  %v1396_v25 = vmul.f32 %v1395_v40, %v1393_v60  ;;  %v1407_v30 = vmul.f32 %v1406_v0, %v1393_v60  ;;  %v1441_v52 = vpop.permute.xlu1 %1440  ;;  %v1446_v40 = vpop.permute.xlu2 %1445 }
 0x37f   : > { %v1360_v5 = vmul.f32 %v1359_v14, %v1353_v46 }
 0x380   : > { %v1372_v39 = vadd.f32 0.4994258, %v1371_v1  ;;  %v1408_v10 = vadd.f32 0.014752088, %v1407_v30  ;;  %v1397_v16 = vadd.f32 0.0036580483, %v1396_v25 }
 0x381   : > { %v1361_v27 = vadd.f32 0.18741608, %v1360_v5 }
 0x382   : > { %v1373_v28 = vmul.f32 %v1372_v39, %v1353_v46  ;;  %v1409_v2 = vmul.f32 %v1408_v10, %v1393_v60  ;;  %v1398_v37 = vmul.f32 %v1397_v16, %v1393_v60 }
 0x383   : > { %v1362_v7 = vmul.f32 %v1361_v27, %v1353_v46 }
 0x384   : > { %v1374_v9 = vadd.f32 1.0, %v1373_v28  ;;  %v1410_v23 = vadd.f32 0.112945676, %v1409_v2  ;;  %v1399_v3 = vadd.f32 0.05243302, %v1398_v37 }
 0x385   : > { %v1363_v18 = vadd.f32 1.1283791, %v1362_v7 }
 0x386   : > { %1767 = vrcp.f32 %v1374_v9  ;;  %v1411_v48 = vmul.f32 %v1410_v23, %v1393_v60  ;;  %v1400_v24 = vmul.f32 %v1399_v3, %v1393_v60  ;;  %v1386_v38 = vand.u32 2147483648, %v1374_v9  ;;  %v1461_v4 = vpop.permute.xlu1 %1460 }
 0x387   : > { %v1384_v47 = vand.u32 2147483647, %v1374_v9  ;;  %vm1380_vm3 = vweird.f32 %v1374_v9  ;;  %v1364_v19 = vmul.f32 %v1363_v18, %v2581_v62  ;;  %v1463_v13 = vperm.slane %v1461_v4, 0 }
 0x388   : > { %v1412_v17 = vadd.f32 0.4994258, %v1411_v48  ;;  %v1401_v51 = vadd.f32 0.18741608, %v1400_v24  ;;  %v1387_v41 = vor.u32 1.1754944e-38, %v1386_v38 }
 0x389   : > { %vm1385_vm5 = vcmp.eq.f32.partialorder %v1384_v47, 8.507059e+37 }
 0x38a   : > { %v1413_v35 = vmul.f32 %v1412_v17, %v1393_v60  ;;  %v1402_v11 = vmul.f32 %v1401_v51, %v1393_v60 }
 0x38c   : > { %v1768_v54 = vpop.eup %1767  ;;  %v1414_v22 = vadd.f32 1.0, %v1413_v35  ;;  %v1403_v46 = vadd.f32 1.1283791, %v1402_v11 }
 0x38d   : > { %v1376_v20 = vmul.f32 %v1768_v54, %v1374_v9  ;;  %vm1381_vm0 = vweird.f32 %v1768_v54 }
 0x38e   : > { %1769 = vrcp.f32 %v1414_v22  ;;  %vm1382_vm4 = vmor %vm1380_vm3, %vm1381_vm0  ;;  %v1426_v53 = vand.u32 2147483648, %v1414_v22  ;;  %v1424_v61 = vand.u32 2147483647, %v1414_v22  ;;  %vm1420_vm8 = vweird.f32 %v1414_v22 }
 0x38f   : > { %v1377_v33 = vsub.f32 1.0, %v1376_v20  ;;  %v1404_v59 = vmul.f32 %v1403_v46, %v2588_v43 }
 0x390   : > { %v1427_v34 = vor.u32 1.1754944e-38, %v1426_v53  ;;  %vm1425_vm10 = vcmp.eq.f32.partialorder %v1424_v61, 8.507059e+37 }
 0x391   : > { %v1378_v45 = vmul.f32 %v1768_v54, %v1377_v33 }
 0x393   : > { %v1379_v21 = vadd.f32 %v1768_v54, %v1378_v45 }
 0x394   : > { %v1770_v29 = vpop.eup %1769 }
 0x395   : > { %v1383_v8 = vsel %vm1382_vm4, %v1768_v54, %v1379_v21  ;;  %v1416_v55 = vmul.f32 %v1770_v29, %v1414_v22  ;;  %vm1421_vm6 = vweird.f32 %v1770_v29 }
 0x396   : > { %v1388_v57 = vsel %vm1385_vm5, %v1387_v41, %v1383_v8  ;;  %vm1422_vm9 = vmor %vm1420_vm8, %vm1421_vm6 }
 0x397   : > { %v1389_v15 = vmul.f32 %v1388_v57, %v1364_v19  ;;  %v1417_v44 = vsub.f32 1.0, %v1416_v55 }
 0x399   : > { %v1418_v6 = vmul.f32 %v1770_v29, %v1417_v44  ;;  %v1607_v58 = vclamps-f32 %v1389_v15, 1.0 }
 0x39b   : > { %v1419_v36 = vadd.f32 %v1770_v29, %v1418_v6  ;;  %v1432_v12 = vadd.f32 1.0, %v1607_v58 }
 0x39d   : > { %v1423_v31 = vsel %vm1422_vm9, %v1770_v29, %v1419_v36  ;;  %v1434_v50 = vmul.f32 %v1432_v12, %v1348_v32 }
 0x39e   : > { %v1428_v62 = vsel %vm1425_vm10, %v1427_v34, %v1423_v31 }
 0x39f   : > { %v1429_v49 = vmul.f32 %v1428_v62, %v1404_v59  ;;  %v1448_v0 = vmul.f32 %v1441_v52, %v1434_v50 }
 0x3a1   : > { %v1608_v60 = vclamps-f32 %v1429_v49, 1.0 }
 0x3a3   : > { %v1433_v42 = vadd.f32 1.0, %v1608_v60 }
 0x3a5   : > { %v1435_v26 = vmul.f32 %v1433_v42, %v1349_v56 }
 0x3a7   : > { %v1449_v63 = vmul.f32 %v1446_v40, %v1435_v26 }
 0x3a9   : > { %v1450_v43 = vadd.f32 %v1449_v63, %v1448_v0 }
 0x3ab   : > { %v1451_v1 = vrot.slane %v1450_v43, 4 }
 0x3ad   : > { %v1452_v25 = vadd.f32 %v1451_v1, %v1450_v43 }
 0x3af   : > { %v1453_v30 = vrot.slane %v1452_v25, 2 }
 0x3b1   : > { %v1454_v39 = vadd.f32 %v1453_v30, %v1452_v25 }
 0x3b3   : > { %v1455_v10 = vrot.slane %v1454_v39, 1 }
 0x3b5   : > { %v1456_v14 = vadd.f32 %v1455_v10, %v1454_v39 }
 0x3b7   : > { %v1464_v28 = vadd.f32 %v1463_v13, %v1456_v14 }
 0x3b9   : > { %1465 = vst [vmem:[%s421_s18] sm:$0x1] %v1464_v28 }
 0x3ba   : > { %1798 = shalt.err (!%p1795_p3)
}
 0x3bb   : > { %1628 = dma.vmem_to_hbm [thread:$0]  (%p1937_p5), %s1478_s23, 16, %s1480_s25, %s1467_s26  }
 0x3bc PF: > { %p1634_p4 = scmp.ge.s32.totalorder %s1833_s22, 2  ;;  %s1491_s14 = sand.u32 1, %s1821_s19  }
 0x3bd   : > { %s1492_s18 = scalar_lea.sflag [#allocation4], %s1491_s14 }
 0x3be   : > { %p1631_p7 = pnand %p1634_p4, %p1941_p6 }
 0x3c0   : > { %p1632_p8 = pneg %p1631_p7 }
 0x3c2   : > { %1816 = dma.done.wait (%p1632_p8), %s1492_s18, 16  }
 0x3c3   : > { %1818 = vsyncadd (%p1632_p8), %s1492_s18, 4294967280  ;;  %p23_p9 = scmp.ge.s32.totalorder %s1924_s24, 4   ;;  %s2662_s19 = smov %s1825_s20 }
 0x3c4   : > { %s2663_s20 = smov %s1829_s21  ;;  %s2664_s21 = smov %s1935_s27 }
 0x3c5   : > { %s2665_s22 = smov %s1924_s24  ;;  %25 = sbr.rel (!%p23_p9) target bundleno = 6 (0x6), region = 102 }
 0x3ca   :  { %1497 = vsyncpa [#allocation4], 1 }
 0x3cb   :  { %1499 = vsyncpa [#allocation4 + $0x1], 1 }

</bundles_post_ra>
